<compile_context>
chip_gen: v5e
topology: v5e:2x2
jax: 0.10.0
libtpu: 0.0.40
codegen_flags: <defaults>
</compile_context>

<pallas_src>
import functools

import jax
import jax.numpy as jnp
from jax import lax
from jax.experimental import pallas as pl
from jax.experimental.pallas import tpu as pltpu


# ---------------------------------------------------------------------------
# Fused Pallas kernel: one image per grid step
# ---------------------------------------------------------------------------

def _block_kernel(x_ref, w1_ref, b1_ref, wdw_ref, b2_ref,
                  wse1_ref, bse_ref, wse2_ref, w3_ref, b3_ref,
                  wsk_ref, bsk_ref, o_ref, xpad_ref,
                  *, k, pad, h, w, cexp, lpad):
    f32 = jnp.float32
    x_rows = x_ref[0].astype(f32)                                   # (h*w, cin)

    # ---- expand 1x1 conv + folded BN1 + ReLU ----
    out1 = jnp.dot(x_rows, w1_ref[...], preferred_element_type=f32)
    out1 = jnp.maximum(out1 + b1_ref[...], 0.0)                     # (h*w, cexp)

    # ---- skip branch: 1x1 conv + folded BN (stride==1, cin != cout) ----
    skip = jnp.dot(x_rows, wsk_ref[...], preferred_element_type=f32) + bsk_ref[...]

    # ---- depthwise kxk conv (stride 1) + folded BN2 + ReLU -------------------
    # Pad in a VMEM scratch; interior is stored at sublane offset `lpad` (=8, a
    # sublane-aligned offset) so the store is unmasked; tap reads use shifted
    # (unaligned) loads, which are cheap.
    xpad_ref[...] = jnp.zeros_like(xpad_ref)
    xpad_ref[pad:pad + h, lpad:lpad + w, :] = out1.reshape(h, w, cexp)

    wdw = wdw_ref[...].astype(f32)                                  # (k, k, cexp)
    acc = jnp.zeros((h, w, cexp), f32)
    for kh in range(k):
        for kw in range(k):
            c0 = lpad - pad + kw
            patch = xpad_ref[kh:kh + h, c0:c0 + w, :]               # (h, w, cexp)
            acc = acc + patch * wdw[kh, kw]
    out2 = jnp.maximum(acc + b2_ref[...].reshape(1, 1, cexp), 0.0)
    out2_rows = out2.reshape(h * w, cexp)                           # (h*w, cexp)

    # ---- SE: global average pool + tiny MLP + hardsigmoid gate ----
    pooled = jnp.sum(out2_rows, axis=0, keepdims=True) * (1.0 / (h * w))   # (1, cexp)
    hmid = jnp.maximum(
        jnp.dot(pooled, wse1_ref[...], preferred_element_type=f32) + bse_ref[...], 0.0)
    gate = jnp.clip(
        jnp.dot(hmid, wse2_ref[...], preferred_element_type=f32) * (1.0 / 6.0) + 0.5,
        0.0, 1.0)                                                   # (1, cexp)

    # ---- project 1x1 conv + folded BN3 + residual add + ReLU ----
    out3 = jnp.dot(out2_rows * gate, w3_ref[...], preferred_element_type=f32)
    out3 = jnp.maximum(out3 + b3_ref[...] + skip, 0.0)              # (h*w, cout)
    o_ref[0] = out3.astype(o_ref.dtype)


# ---------------------------------------------------------------------------
# Block forward (single fused pallas_call)
# ---------------------------------------------------------------------------

@functools.partial(jax.jit, static_argnames=("kernel_size", "stride"))
def block_forward(x_nchw, p, *, kernel_size, stride):
    # TODO(synk): stride==2 variants (strided depthwise + the alternative skip
    # paths of the PyTorch Block) are not implemented in the fused kernel.
    assert stride == 1, "fused Pallas Block kernel only supports stride == 1"

    x = jnp.transpose(x_nchw, (0, 2, 3, 1))           # NCHW -> NHWC
    n, h, w, cin = x.shape
    cexp = p["w1"].shape[1]
    cout = p["w3"].shape[1]
    se_mid = p["w_se1"].shape[1]
    k = kernel_size
    pad = k // 2
    lpad = 8                                           # sublane-aligned left pad
    assert pad <= lpad

    # Fold BN scales into weights (free algebraic fold); kernels only add biases.
    w1f = p["w1"] * p["s1"][None, :]
    w_dwf = p["w_dw"] * p["s2"][None, None, :]
    w3f = p["w3"] * p["s3"][None, :]
    w_skipf = p["w_skip"] * p["s_skip"][None, :]
    w_se1f = p["w_se1"] * p["s_se"][None, :]

    x_rows = x.reshape(n, h * w, cin)

    kernel = functools.partial(_block_kernel, k=k, pad=pad, h=h, w=w,
                               cexp=cexp, lpad=lpad)

    out_rows = pl.pallas_call(
        kernel,
        out_shape=jax.ShapeDtypeStruct((n, h * w, cout), x.dtype),
        grid_spec=pltpu.PrefetchScalarGridSpec(
            num_scalar_prefetch=0,
            grid=(n,),
            in_specs=[
                pl.BlockSpec((1, h * w, cin), lambda b: (b, 0, 0)),   # x rows
                pl.BlockSpec((cin, cexp), lambda b: (0, 0)),          # w1 (BN folded)
                pl.BlockSpec((1, cexp), lambda b: (0, 0)),            # b1
                pl.BlockSpec((k, k, cexp), lambda b: (0, 0, 0)),      # w_dw (BN folded)
                pl.BlockSpec((1, cexp), lambda b: (0, 0)),            # b2
                pl.BlockSpec((cexp, se_mid), lambda b: (0, 0)),       # w_se1 (BN folded)
                pl.BlockSpec((1, se_mid), lambda b: (0, 0)),          # b_se
                pl.BlockSpec((se_mid, cexp), lambda b: (0, 0)),       # w_se2
                pl.BlockSpec((cexp, cout), lambda b: (0, 0)),         # w3 (BN folded)
                pl.BlockSpec((1, cout), lambda b: (0, 0)),            # b3
                pl.BlockSpec((cin, cout), lambda b: (0, 0)),          # w_skip (BN folded)
                pl.BlockSpec((1, cout), lambda b: (0, 0)),            # b_skip
            ],
            out_specs=pl.BlockSpec((1, h * w, cout), lambda b: (b, 0, 0)),
            scratch_shapes=[pltpu.VMEM((h + 2 * pad, w + 2 * lpad, cexp), jnp.float32)],
        ),
        compiler_params=pltpu.CompilerParams(dimension_semantics=("parallel",)),
    )(x_rows, w1f, p["b1"].reshape(1, -1), w_dwf, p["b2"].reshape(1, -1),
      w_se1f, p["b_se"].reshape(1, -1), p["w_se2"], w3f, p["b3"].reshape(1, -1),
      w_skipf, p["b_skip"].reshape(1, -1))

    out = out_rows.reshape(n, h, w, cout)
    return jnp.transpose(out, (0, 3, 1, 2))            # NHWC -> NCHW


# ---------------------------------------------------------------------------
# Pure-JAX reference (lax.conv) for validation
# ---------------------------------------------------------------------------

def block_reference(x_nchw, p, *, kernel_size, stride):
    x = jnp.transpose(x_nchw, (0, 2, 3, 1))
    cexp = p["w1"].shape[1]
    pad = kernel_size // 2

    def conv1x1(inp, w):
        return lax.conv_general_dilated(inp, w.reshape(1, 1, *w.shape), (1, 1), "VALID",
                                        dimension_numbers=("NHWC", "HWIO", "NHWC"))

    out = jnp.maximum(conv1x1(x, p["w1"]) * p["s1"] + p["b1"], 0.0)
    w_dw = p["w_dw"].reshape(kernel_size, kernel_size, 1, cexp)
    out = lax.conv_general_dilated(out, w_dw, (stride, stride),
                                   [(pad, pad), (pad, pad)],
                                   dimension_numbers=("NHWC", "HWIO", "NHWC"),
                                   feature_group_count=cexp)
    out = jnp.maximum(out * p["s2"] + p["b2"], 0.0)
    pooled = jnp.mean(out, axis=(1, 2))
    hmid = jnp.maximum(pooled @ p["w_se1"] * p["s_se"] + p["b_se"], 0.0)
    gate = jnp.clip(hmid @ p["w_se2"] * (1.0 / 6.0) + 0.5, 0.0, 1.0)
    out = out * gate[:, None, None, :]
    out = conv1x1(out, p["w3"]) * p["s3"] + p["b3"]
    skip = conv1x1(x, p["w_skip"]) * p["s_skip"] + p["b_skip"]
    out = jnp.maximum(out + skip, 0.0)
    return jnp.transpose(out, (0, 3, 1, 2))


# ---------------------------------------------------------------------------
# Parameter construction (deterministic, synthetic, BN folded in eval mode)
# ---------------------------------------------------------------------------

def fold_bn(gamma, beta, mean, var, eps=1e-5):
    scale = gamma / jnp.sqrt(var + eps)
    bias = beta - mean * scale
    return scale, bias


def make_params(key, cin, cexp, cout, k):
    ks = jax.random.split(key, 24)
    se_mid = max(cexp // 4, 8)

    def bn(i, c):
        gamma = 1.0 + 0.1 * jax.random.normal(ks[i], (c,), jnp.float32)
        beta = 0.1 * jax.random.normal(ks[i + 1], (c,), jnp.float32)
        mean = 0.1 * jax.random.normal(ks[i + 2], (c,), jnp.float32)
        var = 0.5 + jnp.abs(jax.random.normal(ks[i + 3], (c,), jnp.float32))
        return fold_bn(gamma, beta, mean, var)

    s1, b1 = bn(4, cexp)
    s2, b2 = bn(8, cexp)
    s3, b3 = bn(12, cout)
    s_skip, b_skip = bn(16, cout)
    s_se, b_se = bn(20, se_mid)

    return dict(
        w1=0.2 * jax.random.normal(ks[0], (cin, cexp), jnp.float32),
        w_dw=0.2 * jax.random.normal(ks[1], (k, k, cexp), jnp.float32),
        w3=0.2 * jax.random.normal(ks[2], (cexp, cout), jnp.float32),
        w_skip=0.2 * jax.random.normal(ks[3], (cin, cout), jnp.float32),
        w_se1=0.2 * jax.random.normal(ks[21], (cexp, se_mid), jnp.float32),
        w_se2=0.2 * jax.random.normal(ks[22], (se_mid, cexp), jnp.float32),
        s1=s1, b1=b1, s2=s2, b2=b2, s3=s3, b3=b3,
        s_skip=s_skip, b_skip=b_skip, s_se=s_se, b_se=b_se,
    )


if __name__ == "__main__":
    N, CIN, H, W = 2, 16, 16, 16
    CEXP, COUT, K, STRIDE = 32, 24, 3, 1

    key = jax.random.PRNGKey(0)
    kx, kp = jax.random.split(key)
    x = jax.random.normal(kx, (N, CIN, H, W), jnp.float32)
    params = make_params(kp, CIN, CEXP, COUT, K)

    out = jax.block_until_ready(block_forward(x, params, kernel_size=K, stride=STRIDE))
    ref = jax.block_until_ready(block_reference(x, params, kernel_size=K, stride=STRIDE))

    assert out.shape == (N, COUT, H, W), out.shape
    err = float(jnp.max(jnp.abs(out - ref)))
    assert jnp.allclose(out, ref, atol=2e-4, rtol=2e-4), err
    print("KERNEL_OK")
</pallas_src>

<mosaic_0001>
module attributes {stable_mosaic.version = 11 : i64} {
  func.func @_block_kernel(%arg0: i32, %arg1: memref<1x256x16xf32, #tpu.memory_space<vmem>>, %arg2: memref<16x32xf32, #tpu.memory_space<vmem>>, %arg3: memref<1x32xf32, #tpu.memory_space<vmem>>, %arg4: memref<3x3x32xf32, #tpu.memory_space<vmem>>, %arg5: memref<1x32xf32, #tpu.memory_space<vmem>>, %arg6: memref<32x8xf32, #tpu.memory_space<vmem>>, %arg7: memref<1x8xf32, #tpu.memory_space<vmem>>, %arg8: memref<8x32xf32, #tpu.memory_space<vmem>>, %arg9: memref<32x24xf32, #tpu.memory_space<vmem>>, %arg10: memref<1x24xf32, #tpu.memory_space<vmem>>, %arg11: memref<16x24xf32, #tpu.memory_space<vmem>>, %arg12: memref<1x24xf32, #tpu.memory_space<vmem>>, %arg13: memref<1x256x24xf32, #tpu.memory_space<vmem>>, %arg14: memref<18x32x32xf32, #tpu.memory_space<vmem>>) attributes {dimension_semantics = [#tpu.dimension_semantics<parallel>], iteration_bounds = array<i64: 2>, scalar_prefetch = 0 : i64, scratch_operands = 1 : i64, tpu.core_type = #tpu.core_type<tc>, window_params = [{transform_indices = @transform_0, window_bounds = array<i64: 1, 256, 16>}, {pipeline_mode = #tpu.pipeline_mode<synchronous>, transform_indices = @transform_1, window_bounds = array<i64: 16, 32>}, {pipeline_mode = #tpu.pipeline_mode<synchronous>, transform_indices = @transform_2, window_bounds = array<i64: 1, 32>}, {pipeline_mode = #tpu.pipeline_mode<synchronous>, transform_indices = @transform_3, window_bounds = array<i64: 3, 3, 32>}, {pipeline_mode = #tpu.pipeline_mode<synchronous>, transform_indices = @transform_4, window_bounds = array<i64: 1, 32>}, {pipeline_mode = #tpu.pipeline_mode<synchronous>, transform_indices = @transform_5, window_bounds = array<i64: 32, 8>}, {pipeline_mode = #tpu.pipeline_mode<synchronous>, transform_indices = @transform_6, window_bounds = array<i64: 1, 8>}, {pipeline_mode = #tpu.pipeline_mode<synchronous>, transform_indices = @transform_7, window_bounds = array<i64: 8, 32>}, {pipeline_mode = #tpu.pipeline_mode<synchronous>, transform_indices = @transform_8, window_bounds = array<i64: 32, 24>}, {pipeline_mode = #tpu.pipeline_mode<synchronous>, transform_indices = @transform_9, window_bounds = array<i64: 1, 24>}, {pipeline_mode = #tpu.pipeline_mode<synchronous>, transform_indices = @transform_10, window_bounds = array<i64: 16, 24>}, {pipeline_mode = #tpu.pipeline_mode<synchronous>, transform_indices = @transform_11, window_bounds = array<i64: 1, 24>}, {transform_indices = @transform_12, window_bounds = array<i64: 1, 256, 24>}]} {
    %c0 = arith.constant 0 : index
    %c0_0 = arith.constant 0 : index
    %c0_1 = arith.constant 0 : index
    %0 = vector.load %arg1[%c0, %c0_0, %c0_1] : memref<1x256x16xf32, #tpu.memory_space<vmem>>, vector<1x256x16xf32>
    %1 = vector.shape_cast %0 : vector<1x256x16xf32> to vector<256x16xf32>
    %c0_2 = arith.constant 0 : index
    %c0_3 = arith.constant 0 : index
    %2 = vector.load %arg2[%c0_2, %c0_3] : memref<16x32xf32, #tpu.memory_space<vmem>>, vector<16x32xf32>
    %cst = arith.constant dense<0.000000e+00> : vector<256x32xf32>
    %3 = tpu.matmul %1, %2, %cst {dimension_numbers = #tpu.dot_dimension_numbers<[1], [0], [0], [1], [0, 0, 1, 1], [], []>} : vector<256x16xf32>, vector<16x32xf32>, vector<256x32xf32> -> vector<256x32xf32>
    %c0_4 = arith.constant 0 : index
    %c0_5 = arith.constant 0 : index
    %4 = vector.load %arg3[%c0_4, %c0_5] : memref<1x32xf32, #tpu.memory_space<vmem>>, vector<1x32xf32>
    %5 = vector.broadcast %4 : vector<1x32xf32> to vector<256x32xf32>
    %6 = arith.addf %3, %5 : vector<256x32xf32>
    %cst_6 = arith.constant 0.000000e+00 : f32
    %7 = vector.broadcast %cst_6 : f32 to vector<256x32xf32>
    %8 = arith.maximumf %6, %7 : vector<256x32xf32>
    %c0_7 = arith.constant 0 : index
    %c0_8 = arith.constant 0 : index
    %9 = vector.load %arg11[%c0_7, %c0_8] : memref<16x24xf32, #tpu.memory_space<vmem>>, vector<16x24xf32>
    %cst_9 = arith.constant dense<0.000000e+00> : vector<256x24xf32>
    %10 = tpu.matmul %1, %9, %cst_9 {dimension_numbers = #tpu.dot_dimension_numbers<[1], [0], [0], [1], [0, 0, 1, 1], [], []>} : vector<256x16xf32>, vector<16x24xf32>, vector<256x24xf32> -> vector<256x24xf32>
    %c0_10 = arith.constant 0 : index
    %c0_11 = arith.constant 0 : index
    %11 = vector.load %arg12[%c0_10, %c0_11] : memref<1x24xf32, #tpu.memory_space<vmem>>, vector<1x24xf32>
    %12 = vector.broadcast %11 : vector<1x24xf32> to vector<256x24xf32>
    %13 = arith.addf %10, %12 : vector<256x24xf32>
    %cst_12 = arith.constant 0.000000e+00 : f32
    %14 = vector.broadcast %cst_12 : f32 to vector<18x32x32xf32>
    %c0_13 = arith.constant 0 : index
    %c0_14 = arith.constant 0 : index
    %c0_15 = arith.constant 0 : index
    %15 = vector.load %arg14[%c0_13, %c0_14, %c0_15] : memref<18x32x32xf32, #tpu.memory_space<vmem>>, vector<18x32x32xf32>
    tpu.vector_store %arg14[%c0_13, %c0_14, %c0_15], %14 {strides = array<i32>} : memref<18x32x32xf32, #tpu.memory_space<vmem>>, vector<18x32x32xf32>,
    %16 = vector.shape_cast %8 : vector<256x32xf32> to vector<16x16x32xf32>
    %c1 = arith.constant 1 : index
    %c8 = arith.constant 8 : index
    %c0_16 = arith.constant 0 : index
    %17 = vector.load %arg14[%c1, %c8, %c0_16] : memref<18x32x32xf32, #tpu.memory_space<vmem>>, vector<16x16x32xf32>
    tpu.vector_store %arg14[%c1, %c8, %c0_16], %16 {strides = array<i32>} : memref<18x32x32xf32, #tpu.memory_space<vmem>>, vector<16x16x32xf32>,
    %c0_17 = arith.constant 0 : index
    %c0_18 = arith.constant 0 : index
    %c0_19 = arith.constant 0 : index
    %18 = vector.load %arg4[%c0_17, %c0_18, %c0_19] : memref<3x3x32xf32, #tpu.memory_space<vmem>>, vector<3x3x32xf32>
    %cst_20 = arith.constant 0.000000e+00 : f32
    %19 = vector.broadcast %cst_20 : f32 to vector<16x16x32xf32>
    %c0_21 = arith.constant 0 : index
    %c7 = arith.constant 7 : index
    %c0_22 = arith.constant 0 : index
    %20 = vector.load %arg14[%c0_21, %c7, %c0_22] : memref<18x32x32xf32, #tpu.memory_space<vmem>>, vector<16x16x32xf32>
    %21 = vector.extract_strided_slice %18 {offsets = [0, 0, 0], sizes = [1, 1, 32], strides = [1, 1, 1]} : vector<3x3x32xf32> to vector<1x1x32xf32>
    %22 = vector.shape_cast %21 : vector<1x1x32xf32> to vector<32xf32>
    %23 = vector.shape_cast %22 : vector<32xf32> to vector<1x1x32xf32>
    %24 = vector.broadcast %23 : vector<1x1x32xf32> to vector<16x16x32xf32>
    %25 = arith.mulf %20, %24 : vector<16x16x32xf32>
    %26 = arith.addf %19, %25 : vector<16x16x32xf32>
    %c0_23 = arith.constant 0 : index
    %c8_24 = arith.constant 8 : index
    %c0_25 = arith.constant 0 : index
    %27 = vector.load %arg14[%c0_23, %c8_24, %c0_25] : memref<18x32x32xf32, #tpu.memory_space<vmem>>, vector<16x16x32xf32>
    %28 = vector.extract_strided_slice %18 {offsets = [0, 1, 0], sizes = [1, 1, 32], strides = [1, 1, 1]} : vector<3x3x32xf32> to vector<1x1x32xf32>
    %29 = vector.shape_cast %28 : vector<1x1x32xf32> to vector<32xf32>
    %30 = vector.shape_cast %29 : vector<32xf32> to vector<1x1x32xf32>
    %31 = vector.broadcast %30 : vector<1x1x32xf32> to vector<16x16x32xf32>
    %32 = arith.mulf %27, %31 : vector<16x16x32xf32>
    %33 = arith.addf %26, %32 : vector<16x16x32xf32>
    %c0_26 = arith.constant 0 : index
    %c9 = arith.constant 9 : index
    %c0_27 = arith.constant 0 : index
    %34 = vector.load %arg14[%c0_26, %c9, %c0_27] : memref<18x32x32xf32, #tpu.memory_space<vmem>>, vector<16x16x32xf32>
    %35 = vector.extract_strided_slice %18 {offsets = [0, 2, 0], sizes = [1, 1, 32], strides = [1, 1, 1]} : vector<3x3x32xf32> to vector<1x1x32xf32>
    %36 = vector.shape_cast %35 : vector<1x1x32xf32> to vector<32xf32>
    %37 = vector.shape_cast %36 : vector<32xf32> to vector<1x1x32xf32>
    %38 = vector.broadcast %37 : vector<1x1x32xf32> to vector<16x16x32xf32>
    %39 = arith.mulf %34, %38 : vector<16x16x32xf32>
    %40 = arith.addf %33, %39 : vector<16x16x32xf32>
    %c1_28 = arith.constant 1 : index
    %c7_29 = arith.constant 7 : index
    %c0_30 = arith.constant 0 : index
    %41 = vector.load %arg14[%c1_28, %c7_29, %c0_30] : memref<18x32x32xf32, #tpu.memory_space<vmem>>, vector<16x16x32xf32>
    %42 = vector.extract_strided_slice %18 {offsets = [1, 0, 0], sizes = [1, 1, 32], strides = [1, 1, 1]} : vector<3x3x32xf32> to vector<1x1x32xf32>
    %43 = vector.shape_cast %42 : vector<1x1x32xf32> to vector<32xf32>
    %44 = vector.shape_cast %43 : vector<32xf32> to vector<1x1x32xf32>
    %45 = vector.broadcast %44 : vector<1x1x32xf32> to vector<16x16x32xf32>
    %46 = arith.mulf %41, %45 : vector<16x16x32xf32>
    %47 = arith.addf %40, %46 : vector<16x16x32xf32>
    %c1_31 = arith.constant 1 : index
    %c8_32 = arith.constant 8 : index
    %c0_33 = arith.constant 0 : index
    %48 = vector.load %arg14[%c1_31, %c8_32, %c0_33] : memref<18x32x32xf32, #tpu.memory_space<vmem>>, vector<16x16x32xf32>
    %49 = vector.extract_strided_slice %18 {offsets = [1, 1, 0], sizes = [1, 1, 32], strides = [1, 1, 1]} : vector<3x3x32xf32> to vector<1x1x32xf32>
    %50 = vector.shape_cast %49 : vector<1x1x32xf32> to vector<32xf32>
    %51 = vector.shape_cast %50 : vector<32xf32> to vector<1x1x32xf32>
    %52 = vector.broadcast %51 : vector<1x1x32xf32> to vector<16x16x32xf32>
    %53 = arith.mulf %48, %52 : vector<16x16x32xf32>
    %54 = arith.addf %47, %53 : vector<16x16x32xf32>
    %c1_34 = arith.constant 1 : index
    %c9_35 = arith.constant 9 : index
    %c0_36 = arith.constant 0 : index
    %55 = vector.load %arg14[%c1_34, %c9_35, %c0_36] : memref<18x32x32xf32, #tpu.memory_space<vmem>>, vector<16x16x32xf32>
    %56 = vector.extract_strided_slice %18 {offsets = [1, 2, 0], sizes = [1, 1, 32], strides = [1, 1, 1]} : vector<3x3x32xf32> to vector<1x1x32xf32>
    %57 = vector.shape_cast %56 : vector<1x1x32xf32> to vector<32xf32>
    %58 = vector.shape_cast %57 : vector<32xf32> to vector<1x1x32xf32>
    %59 = vector.broadcast %58 : vector<1x1x32xf32> to vector<16x16x32xf32>
    %60 = arith.mulf %55, %59 : vector<16x16x32xf32>
    %61 = arith.addf %54, %60 : vector<16x16x32xf32>
    %c2 = arith.constant 2 : index
    %c7_37 = arith.constant 7 : index
    %c0_38 = arith.constant 0 : index
    %62 = vector.load %arg14[%c2, %c7_37, %c0_38] : memref<18x32x32xf32, #tpu.memory_space<vmem>>, vector<16x16x32xf32>
    %63 = vector.extract_strided_slice %18 {offsets = [2, 0, 0], sizes = [1, 1, 32], strides = [1, 1, 1]} : vector<3x3x32xf32> to vector<1x1x32xf32>
    %64 = vector.shape_cast %63 : vector<1x1x32xf32> to vector<32xf32>
    %65 = vector.shape_cast %64 : vector<32xf32> to vector<1x1x32xf32>
    %66 = vector.broadcast %65 : vector<1x1x32xf32> to vector<16x16x32xf32>
    %67 = arith.mulf %62, %66 : vector<16x16x32xf32>
    %68 = arith.addf %61, %67 : vector<16x16x32xf32>
    %c2_39 = arith.constant 2 : index
    %c8_40 = arith.constant 8 : index
    %c0_41 = arith.constant 0 : index
    %69 = vector.load %arg14[%c2_39, %c8_40, %c0_41] : memref<18x32x32xf32, #tpu.memory_space<vmem>>, vector<16x16x32xf32>
    %70 = vector.extract_strided_slice %18 {offsets = [2, 1, 0], sizes = [1, 1, 32], strides = [1, 1, 1]} : vector<3x3x32xf32> to vector<1x1x32xf32>
    %71 = vector.shape_cast %70 : vector<1x1x32xf32> to vector<32xf32>
    %72 = vector.shape_cast %71 : vector<32xf32> to vector<1x1x32xf32>
    %73 = vector.broadcast %72 : vector<1x1x32xf32> to vector<16x16x32xf32>
    %74 = arith.mulf %69, %73 : vector<16x16x32xf32>
    %75 = arith.addf %68, %74 : vector<16x16x32xf32>
    %c2_42 = arith.constant 2 : index
    %c9_43 = arith.constant 9 : index
    %c0_44 = arith.constant 0 : index
    %76 = vector.load %arg14[%c2_42, %c9_43, %c0_44] : memref<18x32x32xf32, #tpu.memory_space<vmem>>, vector<16x16x32xf32>
    %77 = vector.extract_strided_slice %18 {offsets = [2, 2, 0], sizes = [1, 1, 32], strides = [1, 1, 1]} : vector<3x3x32xf32> to vector<1x1x32xf32>
    %78 = vector.shape_cast %77 : vector<1x1x32xf32> to vector<32xf32>
    %79 = vector.shape_cast %78 : vector<32xf32> to vector<1x1x32xf32>
    %80 = vector.broadcast %79 : vector<1x1x32xf32> to vector<16x16x32xf32>
    %81 = arith.mulf %76, %80 : vector<16x16x32xf32>
    %82 = arith.addf %75, %81 : vector<16x16x32xf32>
    %c0_45 = arith.constant 0 : index
    %c0_46 = arith.constant 0 : index
    %83 = vector.load %arg5[%c0_45, %c0_46] : memref<1x32xf32, #tpu.memory_space<vmem>>, vector<1x32xf32>
    %84 = vector.shape_cast %83 : vector<1x32xf32> to vector<1x1x32xf32>
    %85 = vector.broadcast %84 : vector<1x1x32xf32> to vector<16x16x32xf32>
    %86 = arith.addf %82, %85 : vector<16x16x32xf32>
    %cst_47 = arith.constant 0.000000e+00 : f32
    %87 = vector.broadcast %cst_47 : f32 to vector<16x16x32xf32>
    %88 = arith.maximumf %86, %87 : vector<16x16x32xf32>
    %89 = vector.shape_cast %88 : vector<16x16x32xf32> to vector<256x32xf32>
    %cst_48 = arith.constant dense<0.000000e+00> : vector<32xf32>
    %90 = vector.multi_reduction <add>, %89, %cst_48 [0] : vector<256x32xf32> to vector<32xf32>
    %91 = vector.shape_cast %90 : vector<32xf32> to vector<1x32xf32>
    %cst_49 = arith.constant 3.906250e-03 : f32
    %92 = vector.broadcast %cst_49 : f32 to vector<1x32xf32>
    %93 = arith.mulf %91, %92 : vector<1x32xf32>
    %c0_50 = arith.constant 0 : index
    %c0_51 = arith.constant 0 : index
    %94 = vector.load %arg6[%c0_50, %c0_51] : memref<32x8xf32, #tpu.memory_space<vmem>>, vector<32x8xf32>
    %cst_52 = arith.constant dense<0.000000e+00> : vector<1x8xf32>
    %95 = tpu.matmul %93, %94, %cst_52 {dimension_numbers = #tpu.dot_dimension_numbers<[1], [0], [0], [1], [0, 0, 1, 1], [], []>} : vector<1x32xf32>, vector<32x8xf32>, vector<1x8xf32> -> vector<1x8xf32>
    %c0_53 = arith.constant 0 : index
    %c0_54 = arith.constant 0 : index
    %96 = vector.load %arg7[%c0_53, %c0_54] : memref<1x8xf32, #tpu.memory_space<vmem>>, vector<1x8xf32>
    %97 = arith.addf %95, %96 : vector<1x8xf32>
    %cst_55 = arith.constant 0.000000e+00 : f32
    %98 = vector.broadcast %cst_55 : f32 to vector<1x8xf32>
    %99 = arith.maximumf %97, %98 : vector<1x8xf32>
    %c0_56 = arith.constant 0 : index
    %c0_57 = arith.constant 0 : index
    %100 = vector.load %arg8[%c0_56, %c0_57] : memref<8x32xf32, #tpu.memory_space<vmem>>, vector<8x32xf32>
    %cst_58 = arith.constant dense<0.000000e+00> : vector<1x32xf32>
    %101 = tpu.matmul %99, %100, %cst_58 {dimension_numbers = #tpu.dot_dimension_numbers<[1], [0], [0], [1], [0, 0, 1, 1], [], []>} : vector<1x8xf32>, vector<8x32xf32>, vector<1x32xf32> -> vector<1x32xf32>
    %cst_59 = arith.constant 0.166666672 : f32
    %102 = vector.broadcast %cst_59 : f32 to vector<1x32xf32>
    %103 = arith.mulf %101, %102 : vector<1x32xf32>
    %cst_60 = arith.constant 5.000000e-01 : f32
    %104 = vector.broadcast %cst_60 : f32 to vector<1x32xf32>
    %105 = arith.addf %103, %104 : vector<1x32xf32>
    %cst_61 = arith.constant 0.000000e+00 : f32
    %cst_62 = arith.constant 1.000000e+00 : f32
    %106 = vector.broadcast %cst_61 : f32 to vector<1x32xf32>
    %107 = arith.maximumf %106, %105 : vector<1x32xf32>
    %108 = vector.broadcast %cst_62 : f32 to vector<1x32xf32>
    %109 = arith.minimumf %108, %107 : vector<1x32xf32>
    %110 = vector.broadcast %109 : vector<1x32xf32> to vector<256x32xf32>
    %111 = arith.mulf %89, %110 : vector<256x32xf32>
    %c0_63 = arith.constant 0 : index
    %c0_64 = arith.constant 0 : index
    %112 = vector.load %arg9[%c0_63, %c0_64] : memref<32x24xf32, #tpu.memory_space<vmem>>, vector<32x24xf32>
    %cst_65 = arith.constant dense<0.000000e+00> : vector<256x24xf32>
    %113 = tpu.matmul %111, %112, %cst_65 {dimension_numbers = #tpu.dot_dimension_numbers<[1], [0], [0], [1], [0, 0, 1, 1], [], []>} : vector<256x32xf32>, vector<32x24xf32>, vector<256x24xf32> -> vector<256x24xf32>
    %c0_66 = arith.constant 0 : index
    %c0_67 = arith.constant 0 : index
    %114 = vector.load %arg10[%c0_66, %c0_67] : memref<1x24xf32, #tpu.memory_space<vmem>>, vector<1x24xf32>
    %115 = vector.broadcast %114 : vector<1x24xf32> to vector<256x24xf32>
    %116 = arith.addf %113, %115 : vector<256x24xf32>
    %117 = arith.addf %116, %13 : vector<256x24xf32>
    %cst_68 = arith.constant 0.000000e+00 : f32
    %118 = vector.broadcast %cst_68 : f32 to vector<256x24xf32>
    %119 = arith.maximumf %117, %118 : vector<256x24xf32>
    %c0_69 = arith.constant 0 : index
    %c0_70 = arith.constant 0 : index
    %c0_71 = arith.constant 0 : index
    %120 = vector.load %arg13[%c0_69, %c0_70, %c0_71] : memref<1x256x24xf32, #tpu.memory_space<vmem>>, vector<1x256x24xf32>
    %121 = vector.shape_cast %120 : vector<1x256x24xf32> to vector<256x24xf32>
    %122 = vector.shape_cast %119 : vector<256x24xf32> to vector<1x256x24xf32>
    tpu.vector_store %arg13[%c0_69, %c0_70, %c0_71], %122 {strides = array<i32>} : memref<1x256x24xf32, #tpu.memory_space<vmem>>, vector<1x256x24xf32>,
    return
  }
  func.func @transform_0(%arg0: i32) -> (i32, i32, i32) {
    %c0_i32 = arith.constant 0 : i32
    %c0_i32_0 = arith.constant 0 : i32
    %c0_i32_1 = arith.constant 0 : i32
    return %arg0, %c0_i32, %c0_i32_0 : i32, i32, i32
  }
  func.func @transform_1(%arg0: i32) -> (i32, i32) {
    %c0_i32 = arith.constant 0 : i32
    %c0_i32_0 = arith.constant 0 : i32
    %c0_i32_1 = arith.constant 0 : i32
    return %c0_i32, %c0_i32_0 : i32, i32
  }
  func.func @transform_2(%arg0: i32) -> (i32, i32) {
    %c0_i32 = arith.constant 0 : i32
    %c0_i32_0 = arith.constant 0 : i32
    %c0_i32_1 = arith.constant 0 : i32
    return %c0_i32, %c0_i32_0 : i32, i32
  }
  func.func @transform_3(%arg0: i32) -> (i32, i32, i32) {
    %c0_i32 = arith.constant 0 : i32
    %c0_i32_0 = arith.constant 0 : i32
    %c0_i32_1 = arith.constant 0 : i32
    %c0_i32_2 = arith.constant 0 : i32
    return %c0_i32, %c0_i32_0, %c0_i32_1 : i32, i32, i32
  }
  func.func @transform_4(%arg0: i32) -> (i32, i32) {
    %c0_i32 = arith.constant 0 : i32
    %c0_i32_0 = arith.constant 0 : i32
    %c0_i32_1 = arith.constant 0 : i32
    return %c0_i32, %c0_i32_0 : i32, i32
  }
  func.func @transform_5(%arg0: i32) -> (i32, i32) {
    %c0_i32 = arith.constant 0 : i32
    %c0_i32_0 = arith.constant 0 : i32
    %c0_i32_1 = arith.constant 0 : i32
    return %c0_i32, %c0_i32_0 : i32, i32
  }
  func.func @transform_6(%arg0: i32) -> (i32, i32) {
    %c0_i32 = arith.constant 0 : i32
    %c0_i32_0 = arith.constant 0 : i32
    %c0_i32_1 = arith.constant 0 : i32
    return %c0_i32, %c0_i32_0 : i32, i32
  }
  func.func @transform_7(%arg0: i32) -> (i32, i32) {
    %c0_i32 = arith.constant 0 : i32
    %c0_i32_0 = arith.constant 0 : i32
    %c0_i32_1 = arith.constant 0 : i32
    return %c0_i32, %c0_i32_0 : i32, i32
  }
  func.func @transform_8(%arg0: i32) -> (i32, i32) {
    %c0_i32 = arith.constant 0 : i32
    %c0_i32_0 = arith.constant 0 : i32
    %c0_i32_1 = arith.constant 0 : i32
    return %c0_i32, %c0_i32_0 : i32, i32
  }
  func.func @transform_9(%arg0: i32) -> (i32, i32) {
    %c0_i32 = arith.constant 0 : i32
    %c0_i32_0 = arith.constant 0 : i32
    %c0_i32_1 = arith.constant 0 : i32
    return %c0_i32, %c0_i32_0 : i32, i32
  }
  func.func @transform_10(%arg0: i32) -> (i32, i32) {
    %c0_i32 = arith.constant 0 : i32
    %c0_i32_0 = arith.constant 0 : i32
    %c0_i32_1 = arith.constant 0 : i32
    return %c0_i32, %c0_i32_0 : i32, i32
  }
  func.func @transform_11(%arg0: i32) -> (i32, i32) {
    %c0_i32 = arith.constant 0 : i32
    %c0_i32_0 = arith.constant 0 : i32
    %c0_i32_1 = arith.constant 0 : i32
    return %c0_i32, %c0_i32_0 : i32, i32
  }
  func.func @transform_12(%arg0: i32) -> (i32, i32, i32) {
    %c0_i32 = arith.constant 0 : i32
    %c0_i32_0 = arith.constant 0 : i32
    %c0_i32_1 = arith.constant 0 : i32
    return %arg0, %c0_i32, %c0_i32_0 : i32, i32, i32
  }
}

</mosaic_0001>

<bundles_post_ra>
// kernel: block_forward.1
= control target key start
LH: loop header
LB: loop body
LE: loop exit
PB: predicated region body
PF: predicated region fallthrough
CT: control target
= control target key end

     0   :  { %s4310_s0 = inlined_call_operand.vmem [shape: f32[2,256,16], index: 0, kind: input, shape index: {}]   ;;  %s4311_s1 = inlined_call_operand.vmem [shape: f32[16,32], index: 1, kind: input, shape index: {}]   ;;  %s4312_s2 = inlined_call_operand.vmem [shape: f32[1,32], index: 2, kind: input, shape index: {}]   ;;  %s4313_s3 = inlined_call_operand.vmem [shape: f32[3,3,32], index: 3, kind: input, shape index: {}]   ;;  %s4314_s4 = inlined_call_operand.vmem [shape: f32[1,32], index: 4, kind: input, shape index: {}]   ;;  %s4315_s5 = inlined_call_operand.vmem [shape: f32[32,8], index: 5, kind: input, shape index: {}]   ;;  %s4316_s6 = inlined_call_operand.vmem [shape: f32[1,8], index: 6, kind: input, shape index: {}]   ;;  %s4317_s7 = inlined_call_operand.vmem [shape: f32[8,32], index: 7, kind: input, shape index: {}]   ;;  %s4318_s8 = inlined_call_operand.vmem [shape: f32[32,24], index: 8, kind: input, shape index: {}]   ;;  %s4319_s9 = inlined_call_operand.vmem [shape: f32[1,24], index: 9, kind: input, shape index: {}]   ;;  %s4320_s10 = inlined_call_operand.vmem [shape: f32[16,24], index: 10, kind: input, shape index: {}]   ;;  %s4321_s11 = inlined_call_operand.vmem [shape: f32[1,24], index: 11, kind: input, shape index: {}]   ;;  %s4322_s12 = inlined_call_operand.hbm [shape: f32[2,256,24], index: 12, kind: output, shape index: {}]  }
   0x1   :  { %4360 = sst [smem:[#allocation38_spill]] %s4310_s0 }
   0x2   :  { %4361 = sst [smem:[#allocation39_spill]] %s4311_s1 }
   0x3   :  { %17 = vsyncpa [#allocation4], 0 }
   0x4   :  { %19 = vsyncpa [#allocation4 + $0x1], 0  ;;  %s2747_s21 = smov 0   ;;  %s2749_s22 = smov 0  }
   0x5   :  { %s2751_s23 = smov 0   ;;  %s2753_s24 = smov 0  }
   0x6 LB: > { %s2768_s25 = sadd.s32 4294967295, %s2677_s24   ;;  %s2415_s26 = sadd.s32 4294967294, %s2677_s24   ;;  %s2677_s24 = sphi %s2753_s24, %s4453_s24   ;;  %s2673_s23 = sphi %s2751_s23, %s4452_s23   ;;  %s2669_s22 = sphi %s2749_s22, %s4451_s22   ;;  %s2665_s21 = sphi %s2747_s21, %s4450_s21  }
   0x7   : > { %s2772_s27 = sadd.s32 1, %s2677_s24   ;;  %s289_s28 = sadd.s32 1, %s2673_s23 }
   0x8   : > { %s286_s29 = ssub.s32 %s2677_s24, %s2772_s27  ;;  %p299_p0 = scmp.ne.s32.totalorder %s2673_s23, %s2669_s22 }
   0x9   : > { %p287_p1 = scmp.eq.s32.totalorder %s286_s29, 0  ;;  %p300_p2 = scmp.eq.s32.totalorder %s2768_s25, 1 }
   0xa   : > { %p305_p3 = scmp.ne.s32.totalorder %s2669_s22, %s2665_s21  ;;  %p306_p4 = scmp.eq.s32.totalorder %s2415_s26, 1 }
   0xb   : > { %s2783_s30 = scalar_select %p287_p1, %s2673_s23, %s289_s28  }
   0xc   : > { %p2785_p5 = por %p300_p2, %p299_p0  ;;  %p2789_p6 = por %p306_p4, %p305_p3 }
   0xd   : > { %p2418_p7 = scmp.ge.s32.totalorder %s2677_s24, 1  ;;  %p365_p8 = scmp.lt.s32.totalorder %s2677_s24, 3 }
   0xf   : > { %p366_p9 = pnand %p2418_p7, %p365_p8 }
  0x11   : > { %369 = sbr.rel (%p366_p9) target bundleno = 1043 (0x413), region = 68 }
  0x16   : > { %s4364_s1 = sld [smem:[#allocation39_spill]]  ;;  %p407_p10 = scmp.lt.s32.totalorder %s2768_s25, 1  ;;  %vm450_vm0 = vcmask 130048   ;;  %vm811_vm1 = vcmask 261120   ;;  %v2679_v16 = vmov 0.0   ;;  %vm1962_vm2 = vcmask 64512  }
  0x17   : > { %s4365_s0 = sld [smem:[#allocation38_spill]]  ;;  %812 = vst.msk [vmem:[#allocation2] sm:$0xff] %vm811_vm1, %v2679_v16  ;;  %v2903_v21 = vld [vmem:[%s4312_s2] ss:$0 sm:$0xff]  ;;  %s404_s16 = sand.u32 1, %s2669_s22   ;;  %vm2304_vm3 = vcmask 195584  }
  0x18   : > { %s408_s19 = scalar_select %p407_p10, %s2768_s25, 1  ;;  %813 = vst.msk [vmem:[#allocation2 + $0x8] sm:$0xff] %vm811_vm1, %v2679_v16  ;;  %v917_v55 = vld [vmem:[%s4313_s3] sm:$0x7] }
  0x19   : > { %814 = vst.msk [vmem:[#allocation2 + $0x10] sm:$0xff] %vm811_vm1, %v2679_v16  ;;  %v3034_v58 = vperm.slane %v917_v55, 0  ;;  %v3036_v59 = vperm.slane %v917_v55, 1  ;;  %s2419_s17 = sshll.u32 %s404_s16, 8 }
  0x1a   : > { %s2525_s20 = sshll.u32 %s408_s19, 8  ;;  %816 = vst.msk [vmem:[#allocation2 + $0x20] sm:$0xff] %vm811_vm1, %v2679_v16  ;;  %s4113_s18 = scalar_lea.vmem [#allocation3], %s2419_s17 }
  0x1b   : > { %817 = vst.msk [vmem:[#allocation2 + $0x28] sm:$0xff] %vm811_vm1, %v2679_v16  ;;  %s2526_s19 = sshll.u32 %s2768_s25, 8  ;;  %s2350_s28 = sshll.u32 %s4113_s18, 4  ;;  %s2351_s28 = int_to_ptr.vmem [resolvable:$true] %s2350_s28 }
  0x1c   : > { %v445_v0 = vld [vmem:[%s4364_s1 + $0x8] sm:$0xff]  ;;  %v444_v1 = vld [vmem:[%s4364_s1] sm:$0xff]  ;;  %815 = vst.msk [vmem:[#allocation2 + $0x18] sm:$0xff] %vm811_vm1, %v2679_v16  ;;  %s2349_s26 = scalar_lea.hbm %s4322_s12, %s2526_s19  ;;  %s2338_s25 = scalar_lea.sflag [#allocation4], %s404_s16 }
  0x1d   : > { %561 = vmatpush.msra.mxu0 %v445_v0  ;;  %2527 = vmatpush.msra.mxu2 %v445_v0  ;;  %s2806_s29 = scalar_lea.vmem %s4365_s0, %s2525_s20  ;;  %818 = vst.msk [vmem:[#allocation2 + $0x30] sm:$0xff] %vm811_vm1, %v2679_v16  ;;  %s2352_s15 = sshll.u32 %s2349_s26, 4  ;;  %s2353_s15 = int_to_ptr.hbm [resolvable:$true] %s2352_s15 }
  0x1e   : > { %v412_v2 = vld [vmem:[%s2806_s29] sm:$0xff]  ;;  %v413_v3 = vld [vmem:[%s2806_s29 + $0x8] sm:$0xff]  ;;  %v414_v4 = vld [vmem:[%s2806_s29 + $0x10] sm:$0xff]  ;;  %819 = vst.msk [vmem:[#allocation2 + $0x38] sm:$0xff] %vm811_vm1, %v2679_v16  ;;  %s2629_s17 = sshra.s32 %s2353_s15, 4  ;;  %s2635_s0 = scalar_lea.hbm %s4322_s12, 512  ;;  %s2630_s17 = int_to_ptr.hbm [resolvable:$true] %s2629_s17 }
  0x1f   : > { %562 = vmatpush.msra.mxu0 %v444_v1  ;;  %2528 = vmatpush.msra.mxu2 %v444_v1  ;;  %v415_v5 = vld [vmem:[%s2806_s29 + $0x18] sm:$0xff]  ;;  %v416_v6 = vld [vmem:[%s2806_s29 + $0x20] sm:$0xff]  ;;  %v417_v7 = vld [vmem:[%s2806_s29 + $0x28] sm:$0xff]  ;;  %820 = vst.msk [vmem:[#allocation2 + $0x40] sm:$0xff] %vm811_vm1, %v2679_v16  ;;  %v3041_v1 = vperm.slane %v917_v55, 2  ;;  %s2631_s19 = scalar_lea.hbm %s2630_s17, 256  ;;  %p2636_p0 = scmp.lt.s32.totalorder %s2630_s17, %s4322_s12 }
  0x20   : > { %2422 = vmatmul.msk.f32.vlgmr.msra.gmra.mxu0 %vm450_vm0, %v412_v2  ;;  %v418_v8 = vld [vmem:[%s2806_s29 + $0x30] sm:$0xff]  ;;  %v419_v9 = vld [vmem:[%s2806_s29 + $0x38] sm:$0xff]  ;;  %v420_v10 = vld [vmem:[%s2806_s29 + $0x40] sm:$0xff]  ;;  %821 = vst.msk [vmem:[#allocation2 + $0x48] sm:$0xff] %vm811_vm1, %v2679_v16  ;;  %p2632_p11 = scmp.ne.s32.totalorder %s2630_s17, %s2631_s19  ;;  %p2637_p1 = scmp.lt.s32.totalorder %s2635_s0, %s2631_s19 }
  0x21   : > { %v421_v11 = vld [vmem:[%s2806_s29 + $0x48] sm:$0xff]  ;;  %v422_v12 = vld [vmem:[%s2806_s29 + $0x50] sm:$0xff]  ;;  %v423_v13 = vld [vmem:[%s2806_s29 + $0x58] sm:$0xff]  ;;  %822 = vst.msk [vmem:[#allocation2 + $0x50] sm:$0xff] %vm811_vm1, %v2679_v16 }
  0x22   : > { %v437_v14 = vld [vmem:[%s2806_s29 + $0xc8] sm:$0xff]  ;;  %v424_v15 = vld [vmem:[%s2806_s29 + $0x60] sm:$0xff]  ;;  %v438_v17 = vld [vmem:[%s2806_s29 + $0xd0] sm:$0xff]  ;;  %823 = vst.msk [vmem:[#allocation2 + $0x58] sm:$0xff] %vm811_vm1, %v2679_v16  ;;  %p2633_p12 = pnand %p2632_p11, %p2785_p5  ;;  %p2638_p2 = por %p2637_p1, %p2636_p0 }
  0x23   : > { %2447 = vmatmul.msk.f32.vlgmr.msra.gmra.mxu2 %vm450_vm0, %v437_v14  ;;  %v425_v18 = vld [vmem:[%s2806_s29 + $0x68] sm:$0xff]  ;;  %824 = vst.msk [vmem:[#allocation2 + $0x60] sm:$0xff] %vm811_vm1, %v2679_v16  ;;  %v426_v19 = vld [vmem:[%s2806_s29 + $0x70] sm:$0xff]  ;;  %v427_v20 = vld [vmem:[%s2806_s29 + $0x78] sm:$0xff] }
  0x24   : > { %825 = vst.msk [vmem:[#allocation2 + $0x68] sm:$0xff] %vm811_vm1, %v2679_v16  ;;  %v428_v23 = vld [vmem:[%s2806_s29 + $0x80] sm:$0xff]  ;;  %v429_v27 = vld [vmem:[%s2806_s29 + $0x88] sm:$0xff]  ;;  %v439_v28 = vld [vmem:[%s2806_s29 + $0xd8] sm:$0xff]  ;;  %p2634_p13 = pneg %p2633_p12 }
  0x25   : > { %826 = vst.msk [vmem:[#allocation2 + $0x70] sm:$0xff] %vm811_vm1, %v2679_v16  ;;  %v430_v30 = vld [vmem:[%s2806_s29 + $0x90] sm:$0xff]  ;;  %v440_v31 = vld [vmem:[%s2806_s29 + $0xe0] sm:$0xff]  ;;  %v431_v33 = vld [vmem:[%s2806_s29 + $0x98] sm:$0xff] }
  0x26   : > { %827 = vst.msk [vmem:[#allocation2 + $0x78] sm:$0xff] %vm811_vm1, %v2679_v16  ;;  %v441_v34 = vld [vmem:[%s2806_s29 + $0xe8] sm:$0xff]  ;;  %v432_v36 = vld [vmem:[%s2806_s29 + $0xa0] sm:$0xff]  ;;  %v442_v38 = vld [vmem:[%s2806_s29 + $0xf0] sm:$0xff]  ;;  %p2639_p3 = pnand %p2638_p2, %p2634_p13 }
  0x27   : > { %828 = vst.msk [vmem:[#allocation2 + $0x80] sm:$0xff] %vm811_vm1, %v2679_v16  ;;  %v433_v46 = vld [vmem:[%s2806_s29 + $0xa8] sm:$0xff]  ;;  %v443_v49 = vld [vmem:[%s2806_s29 + $0xf8] sm:$0xff]  ;;  %v434_v52 = vld [vmem:[%s2806_s29 + $0xb0] sm:$0xff] }
  0x28   : > { %2423 = vmatmul.msk.f32.gmra.mxu0 %vm450_vm0, %v413_v3  ;;  %829 = vst.msk [vmem:[#allocation2 + $0x88] sm:$0xff] %vm811_vm1, %v2679_v16  ;;  %v435_v54 = vld [vmem:[%s2806_s29 + $0xb8] sm:$0xff]  ;;  %v921_v56 = vld [vmem:[#allocation2 + $0xf] sm:$0xff]  ;;  %v436_v63 = vld [vmem:[%s2806_s29 + $0xc0] sm:$0xff] }
  0x29   : > { %830 = vst.msk [vmem:[#allocation2 + $0x90] sm:$0xff] %vm811_vm1, %v2679_v16  ;;  %v1018_v57 = vld [vmem:[#allocation2 + $0x10] sm:$0xff]  ;;  %v954_v60 = vmul.f32 %v3034_v58, %v921_v56  ;;  %v920_v3 = vld [vmem:[#allocation2 + $0x7] sm:$0xff] }
  0x2a   : > { %831 = vst.msk [vmem:[#allocation2 + $0x98] sm:$0xff] %vm811_vm1, %v2679_v16  ;;  %v1051_v61 = vmul.f32 %v3036_v59, %v1018_v57  ;;  %v1115_v0 = vld [vmem:[#allocation2 + $0x11] sm:$0xff] }
  0x2b   : > { %2448 = vmatmul.msk.f32.gmra.mxu2 %vm450_vm0, %v438_v17  ;;  %832 = vst.msk [vmem:[#allocation2 + $0xa0] sm:$0xff] %vm811_vm1, %v2679_v16 }
  0x2c   : > { %833 = vst.msk [vmem:[#allocation2 + $0xa8] sm:$0xff] %vm811_vm1, %v2679_v16 }
  0x2d   : > { %834 = vst.msk [vmem:[#allocation2 + $0xb0] sm:$0xff] %vm811_vm1, %v2679_v16 }
  0x2e   : > { %835 = vst.msk [vmem:[#allocation2 + $0xb8] sm:$0xff] %vm811_vm1, %v2679_v16 }
  0x2f   : > { %836 = vst.msk [vmem:[#allocation2 + $0xc0] sm:$0xff] %vm811_vm1, %v2679_v16 }
  0x30   : > { %2424 = vmatmul.msk.f32.gmra.mxu0 %vm450_vm0, %v414_v4  ;;  %837 = vst.msk [vmem:[#allocation2 + $0xc8] sm:$0xff] %vm811_vm1, %v2679_v16  ;;  %v918_v4 = vld [vmem:[%s4313_s3 + $0x4] sm:$0x7] }
  0x31   : > { %838 = vst.msk [vmem:[#allocation2 + $0xd0] sm:$0xff] %vm811_vm1, %v2679_v16 }
  0x32   : > { %839 = vst.msk [vmem:[#allocation2 + $0xd8] sm:$0xff] %vm811_vm1, %v2679_v16 }
  0x33   : > { %840 = vst.msk [vmem:[#allocation2 + $0xe0] sm:$0xff] %vm811_vm1, %v2679_v16  ;;  %2449 = vmatmul.msk.f32.gmra.mxu2 %vm450_vm0, %v439_v28 }
  0x34   : > { %841 = vst.msk [vmem:[#allocation2 + $0xe8] sm:$0xff] %vm811_vm1, %v2679_v16 }
  0x35   : > { %842 = vst.msk [vmem:[#allocation2 + $0xf0] sm:$0xff] %vm811_vm1, %v2679_v16 }
  0x36   : > { %843 = vst.msk [vmem:[#allocation2 + $0xf8] sm:$0xff] %vm811_vm1, %v2679_v16 }
  0x37   : > { %844 = vst.msk [vmem:[#allocation2 + $0x100] sm:$0xff] %vm811_vm1, %v2679_v16 }
  0x38   : > { %2425 = vmatmul.msk.f32.gmra.mxu0 %vm450_vm0, %v415_v5  ;;  %845 = vst.msk [vmem:[#allocation2 + $0x108] sm:$0xff] %vm811_vm1, %v2679_v16  ;;  %v1017_v5 = vld [vmem:[#allocation2 + $0x8] sm:$0xff] }
  0x39   : > { %846 = vst.msk [vmem:[#allocation2 + $0x110] sm:$0xff] %vm811_vm1, %v2679_v16 }
  0x3a   : > { %847 = vst.msk [vmem:[#allocation2 + $0x118] sm:$0xff] %vm811_vm1, %v2679_v16 }
  0x3b   : > { %848 = vst.msk [vmem:[#allocation2 + $0x120] sm:$0xff] %vm811_vm1, %v2679_v16  ;;  %2450 = vmatmul.msk.f32.gmra.mxu2 %vm450_vm0, %v440_v31  ;;  %v3063_v31 = vperm.slane %v918_v4, 1 }
  0x3c   : > { %849 = vst.msk [vmem:[#allocation2 + $0x128] sm:$0xff] %vm811_vm1, %v2679_v16 }
  0x3d   : > { %850 = vst.msk [vmem:[#allocation2 + $0x130] sm:$0xff] %vm811_vm1, %v2679_v16 }
  0x3e   : > { %851 = vst.msk [vmem:[#allocation2 + $0x138] sm:$0xff] %vm811_vm1, %v2679_v16 }
  0x3f   : > { %852 = vst.msk [vmem:[#allocation2 + $0x140] sm:$0xff] %vm811_vm1, %v2679_v16 }
  0x40   : > { %2426 = vmatmul.msk.f32.gmra.mxu0 %vm450_vm0, %v416_v6  ;;  %853 = vst.msk [vmem:[#allocation2 + $0x148] sm:$0xff] %vm811_vm1, %v2679_v16  ;;  %v1083_v6 = vadd.f32 %v1051_v61, %v954_v60 }
  0x41   : > { %854 = vst.msk [vmem:[#allocation2 + $0x150] sm:$0xff] %vm811_vm1, %v2679_v16 }
  0x42   : > { %855 = vst.msk [vmem:[#allocation2 + $0x158] sm:$0xff] %vm811_vm1, %v2679_v16 }
  0x43   : > { %856 = vst.msk [vmem:[#allocation2 + $0x160] sm:$0xff] %vm811_vm1, %v2679_v16  ;;  %2451 = vmatmul.msk.f32.gmra.mxu2 %vm450_vm0, %v441_v34 }
  0x44   : > { %857 = vst.msk [vmem:[#allocation2 + $0x168] sm:$0xff] %vm811_vm1, %v2679_v16 }
  0x45   : > { %858 = vst.msk [vmem:[#allocation2 + $0x170] sm:$0xff] %vm811_vm1, %v2679_v16 }
  0x46   : > { %859 = vst.msk [vmem:[#allocation2 + $0x178] sm:$0xff] %vm811_vm1, %v2679_v16 }
  0x47   : > { %860 = vst.msk [vmem:[#allocation2 + $0x180] sm:$0xff] %vm811_vm1, %v2679_v16 }
  0x48   : > { %2427 = vmatmul.msk.f32.gmra.mxu0 %vm450_vm0, %v417_v7  ;;  %861 = vst.msk [vmem:[#allocation2 + $0x188] sm:$0xff] %vm811_vm1, %v2679_v16  ;;  %v1148_v7 = vmul.f32 %v3041_v1, %v1115_v0 }
  0x49   : > { %862 = vst.msk [vmem:[#allocation2 + $0x190] sm:$0xff] %vm811_vm1, %v2679_v16 }
  0x4a   : > { %863 = vst.msk [vmem:[#allocation2 + $0x198] sm:$0xff] %vm811_vm1, %v2679_v16 }
  0x4b   : > { %864 = vst.msk [vmem:[#allocation2 + $0x1a0] sm:$0xff] %vm811_vm1, %v2679_v16  ;;  %2452 = vmatmul.msk.f32.gmra.mxu2 %vm450_vm0, %v442_v38 }
  0x4c   : > { %865 = vst.msk [vmem:[#allocation2 + $0x1a8] sm:$0xff] %vm811_vm1, %v2679_v16 }
  0x4d   : > { %866 = vst.msk [vmem:[#allocation2 + $0x1b0] sm:$0xff] %vm811_vm1, %v2679_v16 }
  0x4e   : > { %867 = vst.msk [vmem:[#allocation2 + $0x1b8] sm:$0xff] %vm811_vm1, %v2679_v16 }
  0x4f   : > { %868 = vst.msk [vmem:[#allocation2 + $0x1c0] sm:$0xff] %vm811_vm1, %v2679_v16 }
  0x50   : > { %2428 = vmatmul.msk.f32.gmra.mxu0 %vm450_vm0, %v418_v8  ;;  %869 = vst.msk [vmem:[#allocation2 + $0x1c8] sm:$0xff] %vm811_vm1, %v2679_v16  ;;  %v953_v8 = vmul.f32 %v3034_v58, %v920_v3 }
  0x51   : > { %870 = vst.msk [vmem:[#allocation2 + $0x1d0] sm:$0xff] %vm811_vm1, %v2679_v16 }
  0x52   : > { %871 = vst.msk [vmem:[#allocation2 + $0x1d8] sm:$0xff] %vm811_vm1, %v2679_v16 }
  0x53   : > { %872 = vst.msk [vmem:[#allocation2 + $0x1e0] sm:$0xff] %vm811_vm1, %v2679_v16  ;;  %2453 = vmatmul.msk.f32.gmra.mxu2 %vm450_vm0, %v443_v49 }
  0x54   : > { %873 = vst.msk [vmem:[#allocation2 + $0x1e8] sm:$0xff] %vm811_vm1, %v2679_v16 }
  0x55   : > { %874 = vst.msk [vmem:[#allocation2 + $0x1f0] sm:$0xff] %vm811_vm1, %v2679_v16 }
  0x56   : > { %875 = vst.msk [vmem:[#allocation2 + $0x1f8] sm:$0xff] %vm811_vm1, %v2679_v16 }
  0x57   : > { %876 = vst.msk [vmem:[#allocation2 + $0x200] sm:$0xff] %vm811_vm1, %v2679_v16 }
  0x58   : > { %2429 = vmatmul.msk.f32.gmra.mxu0 %vm450_vm0, %v419_v9  ;;  %877 = vst.msk [vmem:[#allocation2 + $0x208] sm:$0xff] %vm811_vm1, %v2679_v16 }
  0x59   : > { %878 = vst.msk [vmem:[#allocation2 + $0x210] sm:$0xff] %vm811_vm1, %v2679_v16 }
  0x5a   : > { %879 = vst.msk [vmem:[#allocation2 + $0x218] sm:$0xff] %vm811_vm1, %v2679_v16 }
  0x5b   : > { %880 = vst.msk [vmem:[#allocation2 + $0x220] sm:$0xff] %vm811_vm1, %v2679_v16 }
  0x5c   : > { %881 = vst.msk [vmem:[#allocation2 + $0x228] sm:$0xff] %vm811_vm1, %v2679_v16 }
  0x5d   : > { %882 = vst.msk [vmem:[#allocation2 + $0x230] sm:$0xff] %vm811_vm1, %v2679_v16 }
  0x5e   : > { %883 = vst.msk [vmem:[#allocation2 + $0x238] sm:$0xff] %vm811_vm1, %v2679_v16  ;;  %v1180_v16 = vadd.f32 %v1148_v7, %v1083_v6 }
  0x60   : > { %2430 = vmatmul.msk.f32.gmra.mxu0 %vm450_vm0, %v420_v10 }
  0x68   : > { %2431 = vmatmul.msk.f32.gmra.mxu0 %vm450_vm0, %v421_v11  ;;  %v1050_v11 = vmul.f32 %v3036_v59, %v1017_v5 }
  0x70   : > { %2432 = vmatmul.msk.f32.gmra.mxu0 %vm450_vm0, %v422_v12  ;;  %v3051_v12 = vperm.slane %v918_v4, 0 }
  0x78   : > { %2433 = vmatmul.msk.f32.gmra.mxu0 %vm450_vm0, %v423_v13 }
  0x80   : > { %2434 = vmatmul.msk.f32.gmra.mxu0 %vm450_vm0, %v424_v15  ;;  %v1114_v15 = vld [vmem:[#allocation2 + $0x9] sm:$0xff] }
  0x88   : > { %2435 = vmatmul.msk.f32.gmra.mxu0 %vm450_vm0, %v425_v18 }
  0x90   : > { %2436 = vmatmul.msk.f32.gmra.mxu0 %vm450_vm0, %v426_v19 }
  0x98   : > { %2437 = vmatmul.msk.f32.gmra.mxu0 %vm450_vm0, %v427_v20 }
  0x9d   : > { %v564_v22 = vpop.f32.mrf.mxu0 }
  0x9e   : > { %v565_v24 = vadd.f32 %v2903_v21, %v564_v22 }
  0xa0   : > { %v660_v25 = vmax.f32 %v565_v24, 0.0  ;;  %2438 = vmatmul.msk.f32.gmra.mxu0 %vm450_vm0, %v428_v23 }
  0xa2   : > { %885 = vst.msk [vmem:[#allocation2 + $0x28] sm:$0xff] %vm811_vm1, %v660_v25 }
  0xa5   : > { %v567_v26 = vpop.f32.mrf.mxu0 }
  0xa6   : > { %v568_v37 = vadd.f32 %v2903_v21, %v567_v26  ;;  %v1082_v26 = vadd.f32 %v1050_v11, %v953_v8 }
  0xa8   : > { %2439 = vmatmul.msk.f32.gmra.mxu0 %vm450_vm0, %v429_v27  ;;  %v661_v42 = vmax.f32 %v568_v37, 0.0  ;;  %v1147_v27 = vmul.f32 %v3041_v1, %v1114_v15 }
  0xa9   : > { %v922_v24 = vld [vmem:[#allocation2 + $0x27] sm:$0xff] }
  0xaa   : > { %886 = vst.msk [vmem:[#allocation2 + $0x30] sm:$0xff] %vm811_vm1, %v661_v42  ;;  %v1019_v25 = vld [vmem:[#allocation2 + $0x28] sm:$0xff]  ;;  %v955_v34 = vmul.f32 %v3034_v58, %v922_v24  ;;  %v1179_v37 = vadd.f32 %v1147_v27, %v1082_v26  ;;  %v1244_v38 = vmul.f32 %v3051_v12, %v922_v24 }
  0xab   : > { %v1341_v60 = vmul.f32 %v3063_v31, %v1019_v25 }
  0xad   : > { %v570_v29 = vpop.f32.mrf.mxu0 }
  0xae   : > { %v571_v39 = vadd.f32 %v2903_v21, %v570_v29 }
  0xb0   : > { %2440 = vmatmul.msk.f32.gmra.mxu0 %vm450_vm0, %v430_v30  ;;  %v662_v43 = vmax.f32 %v571_v39, 0.0 }
  0xb1   : > { %v923_v9 = vld [vmem:[#allocation2 + $0x2f] sm:$0xff] }
  0xb2   : > { %887 = vst.msk [vmem:[#allocation2 + $0x48] sm:$0xff] %vm811_vm1, %v662_v43  ;;  %v1020_v18 = vld [vmem:[#allocation2 + $0x30] sm:$0xff]  ;;  %v1245_v19 = vmul.f32 %v3051_v12, %v923_v9  ;;  %v956_v29 = vmul.f32 %v3034_v58, %v923_v9 }
  0xb3   : > { %v1053_v30 = vmul.f32 %v3036_v59, %v1020_v18  ;;  %v1117_v39 = vld [vmem:[#allocation2 + $0x31] sm:$0xff] }
  0xb5   : > { %v573_v32 = vpop.f32.mrf.mxu0 }
  0xb6   : > { %v574_v40 = vadd.f32 %v2903_v21, %v573_v32  ;;  %v1116_v32 = vld [vmem:[#allocation2 + $0x29] sm:$0xff] }
  0xb8   : > { %2441 = vmatmul.msk.f32.gmra.mxu0 %vm450_vm0, %v431_v33  ;;  %v663_v44 = vmax.f32 %v574_v40, 0.0  ;;  %v1277_v33 = vadd.f32 %v1245_v19, %v1180_v16  ;;  %v1342_v40 = vmul.f32 %v3063_v31, %v1020_v18 }
  0xb9   : > { %v924_v42 = vld [vmem:[#allocation2 + $0x47] sm:$0xff] }
  0xba   : > { %888 = vst.msk [vmem:[#allocation2 + $0x50] sm:$0xff] %vm811_vm1, %v663_v44  ;;  %v1085_v44 = vadd.f32 %v1053_v30, %v956_v29  ;;  %v957_v16 = vmul.f32 %v3034_v58, %v924_v42 }
  0xbd   : > { %v576_v35 = vpop.f32.mrf.mxu0 }
  0xbe   : > { %v577_v41 = vadd.f32 %v2903_v21, %v576_v35  ;;  %v1052_v35 = vmul.f32 %v3036_v59, %v1019_v25 }
  0xc0   : > { %2442 = vmatmul.msk.f32.gmra.mxu0 %vm450_vm0, %v432_v36  ;;  %v664_v47 = vmax.f32 %v577_v41, 0.0  ;;  %v919_v36 = vld [vmem:[%s4313_s3 + $0x8] sm:$0x7]  ;;  %v3073_v41 = vperm.slane %v918_v4, 2  ;;  %v1084_v49 = vadd.f32 %v1052_v35, %v955_v34 }
  0xc1   : > { %v925_v43 = vld [vmem:[#allocation2 + $0x4f] sm:$0xff]  ;;  %v3086_v7 = vperm.slane %v919_v36, 1  ;;  %v3093_v19 = vperm.slane %v919_v36, 2 }
  0xc2   : > { %889 = vst.msk [vmem:[#allocation2 + $0x68] sm:$0xff] %vm811_vm1, %v664_v47  ;;  %v1374_v47 = vadd.f32 %v1342_v40, %v1277_v33  ;;  %v1438_v61 = vmul.f32 %v3073_v41, %v1116_v32  ;;  %v1022_v0 = vld [vmem:[#allocation2 + $0x50] sm:$0xff]  ;;  %v958_v27 = vmul.f32 %v3034_v58, %v925_v43 }
  0xc3   : > { %v1344_v11 = vmul.f32 %v3063_v31, %v1022_v0  ;;  %v1634_v18 = vmul.f32 %v3086_v7, %v1022_v0 }
  0xc5   : > { %v579_v45 = vpop.f32.mrf.mxu0 }
  0xc6   : > { %v580_v48 = vadd.f32 %v2903_v21, %v579_v45  ;;  %v1149_v45 = vmul.f32 %v3041_v1, %v1116_v32 }
  0xc8   : > { %v665_v50 = vmax.f32 %v580_v48, 0.0  ;;  %2443 = vmatmul.msk.f32.gmra.mxu0 %vm450_vm0, %v433_v46  ;;  %v3076_v48 = vperm.slane %v919_v36, 0  ;;  %v1181_v56 = vadd.f32 %v1149_v45, %v1084_v49 }
  0xc9   : > { %v926_v9 = vld [vmem:[#allocation2 + $0x67] sm:$0xff] }
  0xca   : > { %890 = vst.msk [vmem:[#allocation2 + $0x70] sm:$0xff] %vm811_vm1, %v665_v50  ;;  %v1150_v50 = vmul.f32 %v3041_v1, %v1117_v39  ;;  %v1537_v55 = vmul.f32 %v3076_v48, %v925_v43  ;;  %v1536_v6 = vmul.f32 %v3076_v48, %v924_v42  ;;  %v1538_v25 = vmul.f32 %v3076_v48, %v926_v9 }
  0xcc   : > { %v1182_v57 = vadd.f32 %v1150_v50, %v1085_v44 }
  0xcd   : > { %v582_v51 = vpop.f32.mrf.mxu0 }
  0xce   : > { %v583_v2 = vadd.f32 %v2903_v21, %v582_v51  ;;  %v1246_v51 = vmul.f32 %v3051_v12, %v924_v42 }
  0xd0   : > { %2444 = vmatmul.msk.f32.gmra.mxu0 %vm450_vm0, %v434_v52  ;;  %v666_v10 = vmax.f32 %v583_v2, 0.0  ;;  %v1247_v52 = vmul.f32 %v3051_v12, %v925_v43  ;;  %v1118_v2 = vld [vmem:[#allocation2 + $0x49] sm:$0xff]  ;;  %v1278_v3 = vadd.f32 %v1246_v51, %v1181_v56 }
  0xd1   : > { %v1151_v35 = vmul.f32 %v3041_v1, %v1118_v2  ;;  %v1730_v36 = vmul.f32 %v3093_v19, %v1118_v2  ;;  %v1024_v50 = vld [vmem:[#allocation2 + $0x70] sm:$0xff] }
  0xd2   : > { %891 = vst.msk [vmem:[#allocation2 + $0x88] sm:$0xff] %vm811_vm1, %v666_v10  ;;  %v1279_v4 = vadd.f32 %v1247_v52, %v1182_v57 }
  0xd4   : > { %v1376_v24 = vadd.f32 %v1344_v11, %v1279_v4  ;;  %v959_v4 = vmul.f32 %v3034_v58, %v926_v9 }
  0xd5   : > { %v585_v53 = vpop.f32.mrf.mxu0 }
  0xd6   : > { %v586_v13 = vadd.f32 %v2903_v21, %v585_v53  ;;  %v1276_v53 = vadd.f32 %v1244_v38, %v1179_v37  ;;  %v1023_v38 = vld [vmem:[#allocation2 + $0x68] sm:$0xff] }
  0xd7   : > { %v1635_v51 = vmul.f32 %v3086_v7, %v1023_v38 }
  0xd8   : > { %2445 = vmatmul.msk.f32.gmra.mxu0 %vm450_vm0, %v435_v54  ;;  %v667_v20 = vmax.f32 %v586_v13, 0.0  ;;  %v1439_v54 = vmul.f32 %v3073_v41, %v1117_v39  ;;  %v1373_v5 = vadd.f32 %v1341_v60, %v1276_v53  ;;  %v1440_v13 = vmul.f32 %v3073_v41, %v1118_v2  ;;  %v1120_v39 = vld [vmem:[#allocation2 + $0x69] sm:$0xff]  ;;  %v3112_v60 = vld [vmem:[%s4314_s4] ss:$0 sm:$0xff] }
  0xd9   : > { %v1732_v53 = vmul.f32 %v3093_v19, %v1120_v39 }
  0xda   : > { %892 = vst.msk [vmem:[#allocation2 + $0x90] sm:$0xff] %vm811_vm1, %v667_v20  ;;  %v1470_v15 = vadd.f32 %v1438_v61, %v1373_v5  ;;  %v927_v20 = vld [vmem:[#allocation2 + $0x6f] sm:$0xff] }
  0xdb   : > { %v1539_v33 = vmul.f32 %v3076_v48, %v927_v20  ;;  %v1121_v5 = vld [vmem:[#allocation2 + $0x71] sm:$0xff] }
  0xdc   : > { %v1568_v26 = vadd.f32 %v1536_v6, %v1470_v15 }
  0xdd   : > { %v588_v62 = vpop.f32.mrf.mxu0 }
  0xde   : > { %v589_v14 = vadd.f32 %v2903_v21, %v588_v62  ;;  %v1471_v62 = vadd.f32 %v1439_v54, %v1374_v47 }
  0xe0   : > { %2446 = vmatmul.msk.f32.gmra.mxu0 %vm450_vm0, %v436_v63  ;;  %v668_v22 = vmax.f32 %v589_v14, 0.0  ;;  %v1021_v63 = vld [vmem:[#allocation2 + $0x48] sm:$0xff]  ;;  %v1569_v8 = vadd.f32 %v1537_v55, %v1471_v62  ;;  %v1249_v62 = vmul.f32 %v3051_v12, %v927_v20 }
  0xe1   : > { %v1343_v10 = vmul.f32 %v3063_v31, %v1021_v63  ;;  %v1633_v34 = vmul.f32 %v3086_v7, %v1021_v63 }
  0xe2   : > { %893 = vst.msk [vmem:[#allocation2 + $0xa8] sm:$0xff] %vm811_vm1, %v668_v22  ;;  %v1054_v22 = vmul.f32 %v3036_v59, %v1021_v63  ;;  %v1666_v29 = vadd.f32 %v1634_v18, %v1569_v8  ;;  %v1636_v63 = vmul.f32 %v3086_v7, %v1024_v50  ;;  %v1056_v8 = vmul.f32 %v3036_v59, %v1023_v38 }
  0xe3   : > { %v1665_v45 = vadd.f32 %v1633_v34, %v1568_v26  ;;  %v1345_v26 = vmul.f32 %v3063_v31, %v1023_v38 }
  0xe4   : > { %v1086_v44 = vadd.f32 %v1054_v22, %v957_v16 }
  0xe5   : > { %v591_v17 = vpop.f32.mrf.mxu0  ;;  %v1762_v57 = vadd.f32 %v1730_v36, %v1665_v45  ;;  %v929_v36 = vld [vmem:[#allocation2 + $0x8f] sm:$0xff]  ;;  %v1443_v45 = vmul.f32 %v3073_v41, %v1121_v5 }
  0xe6   : > { %v592_v23 = vadd.f32 %v2903_v21, %v591_v17  ;;  %v1119_v17 = vld [vmem:[#allocation2 + $0x51] sm:$0xff]  ;;  %v1183_v56 = vadd.f32 %v1151_v35, %v1086_v44 }
  0xe7   : > { %v1441_v30 = vmul.f32 %v3073_v41, %v1119_v17  ;;  %v1731_v37 = vmul.f32 %v3093_v19, %v1119_v17  ;;  %v1152_v55 = vmul.f32 %v3041_v1, %v1119_v17  ;;  %v3126_v15 = vadd.f32 %v3112_v60, %v1762_v57 }
  0xe8   : > { %v669_v28 = vmax.f32 %v592_v23, 0.0  ;;  %v1375_v23 = vadd.f32 %v1343_v10, %v1278_v3  ;;  %v960_v17 = vmul.f32 %v3034_v58, %v927_v20  ;;  %v1541_v57 = vmul.f32 %v3076_v48, %v929_v36 }
  0xe9   : > { %v1473_v40 = vadd.f32 %v1441_v30, %v1376_v24  ;;  %v1763_v49 = vadd.f32 %v1731_v37, %v1666_v29  ;;  %4367 = vst [vmem:[#allocation7_spill] sm:$0xff] %v3126_v15  ;;  %v1346_v29 = vmul.f32 %v3063_v31, %v1024_v50 }
  0xea   : > { %894 = vst.msk [vmem:[#allocation2 + $0xb0] sm:$0xff] %vm811_vm1, %v669_v28  ;;  %v1055_v28 = vmul.f32 %v3036_v59, %v1022_v0  ;;  %v1472_v32 = vadd.f32 %v1440_v13, %v1375_v23  ;;  %v928_v23 = vld [vmem:[#allocation2 + $0x87] sm:$0xff] }
  0xeb   : > { %v1571_v52 = vadd.f32 %v1539_v33, %v1473_v40  ;;  %v3118_v3 = vadd.f32 %v3112_v60, %v1763_v49  ;;  %v4334_v33 = vmax.f32 %v3126_v15, 0.0  ;;  %v1540_v35 = vmul.f32 %v3076_v48, %v928_v23 }
  0xec   : > { %v1570_v42 = vadd.f32 %v1538_v25, %v1472_v32  ;;  %v1087_v47 = vadd.f32 %v1055_v28, %v958_v27  ;;  %v1442_v27 = vmul.f32 %v3073_v41, %v1120_v39  ;;  %v1088_v28 = vadd.f32 %v1056_v8, %v959_v4 }
  0xed   : > { %v594_v46 = vpop.f32.mrf.mxu0  ;;  %4366 = vst [vmem:[#allocation6_spill] sm:$0xff] %v3118_v3  ;;  %v1668_v10 = vadd.f32 %v1636_v63, %v1571_v52  ;;  %v4332_v25 = vmax.f32 %v3118_v3, 0.0  ;;  %v1153_v40 = vmul.f32 %v3041_v1, %v1120_v39  ;;  %v1025_v52 = vld [vmem:[#allocation2 + $0x88] sm:$0xff] }
  0xee   : > { %v595_v43 = vadd.f32 %v2903_v21, %v594_v46  ;;  %v1248_v46 = vmul.f32 %v3051_v12, %v926_v9  ;;  %v1667_v61 = vadd.f32 %v1635_v51, %v1570_v42  ;;  %v1184_v2 = vadd.f32 %v1152_v55, %v1087_v47  ;;  %v1122_v39 = vld [vmem:[#allocation2 + $0x89] sm:$0xff] }
  0xef   : > { %v1057_v9 = vmul.f32 %v3036_v59, %v1024_v50  ;;  %v1154_v42 = vmul.f32 %v3041_v1, %v1121_v5  ;;  %v1863_v44 = vsel %vm811_vm1, %v4332_v25, 0.0  ;;  %v1862_v55 = vsel %vm811_vm1, %v4334_v33, 0.0 }
  0xf0   : > { %v670_v0 = vmax.f32 %v595_v43, 0.0  ;;  %v1764_v11 = vadd.f32 %v1732_v53, %v1667_v61  ;;  %v1280_v16 = vadd.f32 %v1248_v46, %v1183_v56  ;;  %v1281_v22 = vadd.f32 %v1249_v62, %v1184_v2 }
  0xf1   : > { %v1089_v38 = vadd.f32 %v1057_v9, %v960_v17  ;;  %v1250_v53 = vmul.f32 %v3051_v12, %v928_v23  ;;  %v1864_v46 = vadd.f32 %v1863_v44, %v1862_v55  ;;  %v1185_v61 = vadd.f32 %v1153_v40, %v1088_v28 }
  0xf2   : > { %895 = vst.msk [vmem:[#allocation2 + $0xc8] sm:$0xff] %vm811_vm1, %v670_v0  ;;  %v3137_v30 = vadd.f32 %v3112_v60, %v1764_v11  ;;  %v1377_v34 = vadd.f32 %v1345_v26, %v1280_v16  ;;  %v1378_v43 = vadd.f32 %v1346_v29, %v1281_v22  ;;  %v1026_v0 = vld [vmem:[#allocation2 + $0x90] sm:$0xff]  ;;  %v961_v2 = vmul.f32 %v3034_v58, %v928_v23 }
  0xf3   : > { %v1186_v62 = vadd.f32 %v1154_v42, %v1089_v38  ;;  %v1058_v4 = vmul.f32 %v3036_v59, %v1025_v52  ;;  %v1282_v11 = vadd.f32 %v1250_v53, %v1185_v61  ;;  %v1059_v9 = vmul.f32 %v3036_v59, %v1026_v0  ;;  %v1027_v38 = vld [vmem:[#allocation2 + $0xa8] sm:$0xff] }
  0xf4   : > { %4368 = vst [vmem:[#allocation8_spill] sm:$0xff] %v3137_v30  ;;  %v1474_v47 = vadd.f32 %v1442_v27, %v1377_v34  ;;  %v4330_v51 = vmax.f32 %v3137_v30, 0.0  ;;  %v1475_v63 = vadd.f32 %v1443_v45, %v1378_v43  ;;  %v1347_v23 = vmul.f32 %v3063_v31, %v1025_v52 }
  0xf5   : > { %v597_v14 = vpop.f32.mrf.mxu0  ;;  %v1155_v26 = vmul.f32 %v3041_v1, %v1122_v39  ;;  %v1348_v27 = vmul.f32 %v3063_v31, %v1026_v0  ;;  %v1444_v28 = vmul.f32 %v3073_v41, %v1122_v39  ;;  %v1060_v61 = vmul.f32 %v3036_v59, %v1027_v38 }
  0xf6   : > { %v598_v6 = vadd.f32 %v2903_v21, %v597_v14  ;;  %v1733_v14 = vmul.f32 %v3093_v19, %v1121_v5  ;;  %v1572_v56 = vadd.f32 %v1540_v35, %v1474_v47  ;;  %v1637_v5 = vmul.f32 %v3086_v7, %v1025_v52  ;;  %v931_v35 = vld [vmem:[#allocation2 + $0xaf] sm:$0xff] }
  0xf7   : > { %v1573_v22 = vadd.f32 %v1541_v57, %v1475_v63  ;;  %v1543_v55 = vmul.f32 %v3076_v48, %v931_v35 }
  0xf8   : > { %v671_v18 = vmax.f32 %v598_v6, 0.0  ;;  %v1765_v20 = vadd.f32 %v1733_v14, %v1668_v10  ;;  %v1734_v6 = vmul.f32 %v3093_v19, %v1122_v39  ;;  %v1865_v10 = vsel %vm811_vm1, %v4330_v51, 0.0  ;;  %v930_v14 = vld [vmem:[#allocation2 + $0xa7] sm:$0xff]  ;;  %v1028_v39 = vld [vmem:[#allocation2 + $0xb0] sm:$0xff] }
  0xf9   : > { %v1669_v17 = vadd.f32 %v1637_v5, %v1572_v56  ;;  %v1866_v29 = vadd.f32 %v1865_v10, %v1864_v46  ;;  %v1252_v40 = vmul.f32 %v3051_v12, %v930_v14  ;;  %v1542_v42 = vmul.f32 %v3076_v48, %v930_v14  ;;  %v1125_v10 = vld [vmem:[#allocation2 + $0xb1] sm:$0xff] }
  0xfa   : > { %896 = vst.msk [vmem:[#allocation2 + $0xd0] sm:$0xff] %vm811_vm1, %v671_v18  ;;  %v3150_v50 = vadd.f32 %v3112_v60, %v1765_v20  ;;  %v962_v18 = vmul.f32 %v3034_v58, %v929_v36  ;;  %v1090_v20 = vadd.f32 %v1058_v4, %v961_v2  ;;  %v963_v46 = vmul.f32 %v3034_v58, %v930_v14 }
  0xfb   : > { %v1766_v34 = vadd.f32 %v1734_v6, %v1669_v17  ;;  %v964_v2 = vmul.f32 %v3034_v58, %v931_v35  ;;  %v1061_v6 = vmul.f32 %v3036_v59, %v1028_v39  ;;  %v1349_v17 = vmul.f32 %v3063_v31, %v1027_v38 }
  0xfc   : > { %4369 = vst [vmem:[#allocation9_spill] sm:$0xff] %v3150_v50  ;;  %v4328_v8 = vmax.f32 %v3150_v50, 0.0  ;;  %v1091_v44 = vadd.f32 %v1059_v9, %v962_v18  ;;  %v1639_v18 = vmul.f32 %v3086_v7, %v1027_v38  ;;  %v2588_v50 = vld [vmem:[%s2806_s29 + $0xe0] sm:$0xff] }
  0xfd   : > { %v600_v54 = vpop.f32.mrf.mxu0  ;;  %v3187_v57 = vadd.f32 %v3112_v60, %v1766_v34  ;;  %v3201_v34 = vld [vmem:[#allocation2 + $0xc7] sm:$0xff] }
  0xfe   : > { %v601_v13 = vadd.f32 %v2903_v21, %v600_v54  ;;  %v1251_v54 = vmul.f32 %v3051_v12, %v929_v36  ;;  %v1379_v36 = vadd.f32 %v1347_v23, %v1282_v11  ;;  %v1867_v43 = vsel %vm811_vm1, %v4328_v8, 0.0 }
  0xff   : > { %4370 = vst [vmem:[#allocation10_spill] sm:$0xff] %v3187_v57  ;;  %v1868_v14 = vadd.f32 %v1867_v43, %v1866_v29 }
 0x100   : > { %v672_v24 = vmax.f32 %v601_v13, 0.0  ;;  %v1283_v13 = vadd.f32 %v1251_v54, %v1186_v62  ;;  %v1476_v53 = vadd.f32 %v1444_v28, %v1379_v36  ;;  %v1124_v54 = vld [vmem:[#allocation2 + $0xa9] sm:$0xff] }
 0x101   : > { %v1157_v11 = vmul.f32 %v3041_v1, %v1124_v54  ;;  %v933_v29 = vld [vmem:[#allocation2 + $0xcf] sm:$0xff] }
 0x102   : > { %897 = vst.msk [vmem:[#allocation2 + $0xe8] sm:$0xff] %vm811_vm1, %v672_v24  ;;  %v1123_v24 = vld [vmem:[#allocation2 + $0x91] sm:$0xff] }
 0x103   : > { %v1156_v45 = vmul.f32 %v3041_v1, %v1123_v24  ;;  %v1445_v52 = vmul.f32 %v3073_v41, %v1123_v24  ;;  %v1735_v56 = vmul.f32 %v3093_v19, %v1123_v24  ;;  %v4326_v24 = vmax.f32 %v3187_v57, 0.0 }
 0x105   : > { %v603_v32 = vpop.f32.mrf.mxu0  ;;  %v1188_v23 = vadd.f32 %v1156_v45, %v1091_v44 }
 0x106   : > { %v604_v37 = vadd.f32 %v2903_v21, %v603_v32  ;;  %v1638_v32 = vmul.f32 %v3086_v7, %v1026_v0  ;;  %v1574_v0 = vadd.f32 %v1542_v42, %v1476_v53  ;;  %v1350_v42 = vmul.f32 %v3063_v31, %v1028_v39 }
 0x108   : > { %v673_v49 = vmax.f32 %v604_v37, 0.0  ;;  %v1380_v37 = vadd.f32 %v1348_v27, %v1283_v13  ;;  %v1670_v47 = vadd.f32 %v1638_v32, %v1573_v22  ;;  %v1253_v13 = vmul.f32 %v3051_v12, %v931_v35  ;;  %v639_v35 = vpop.f32.mrf.mxu2 }
 0x109   : > { %v1736_v22 = vmul.f32 %v3093_v19, %v1124_v54  ;;  %v1671_v28 = vadd.f32 %v1639_v18, %v1574_v0  ;;  %v1640_v32 = vmul.f32 %v3086_v7, %v1028_v39  ;;  %v1255_v39 = vmul.f32 %v3051_v12, %v933_v29  ;;  %v1030_v18 = vld [vmem:[#allocation2 + $0xd0] sm:$0xff] }
 0x10a   : > { %898 = vst.msk [vmem:[#allocation2 + $0xf0] sm:$0xff] %vm811_vm1, %v673_v49  ;;  %v1187_v49 = vadd.f32 %v1155_v26, %v1090_v20  ;;  %v1477_v62 = vadd.f32 %v1445_v52, %v1380_v37  ;;  %v1767_v5 = vadd.f32 %v1735_v56, %v1670_v47  ;;  %v1092_v26 = vadd.f32 %v1060_v61, %v963_v46 }
 0x10b   : > { %v1158_v20 = vmul.f32 %v3041_v1, %v1125_v10  ;;  %v1093_v37 = vadd.f32 %v1061_v6, %v964_v2  ;;  %v1768_v44 = vadd.f32 %v1736_v22, %v1671_v28  ;;  %v1869_v47 = vsel %vm811_vm1, %v4326_v24, 0.0 }
 0x10c   : > { %v1284_v63 = vadd.f32 %v1252_v40, %v1187_v49  ;;  %v1575_v9 = vadd.f32 %v1543_v55, %v1477_v62  ;;  %v3204_v36 = vadd.f32 %v3112_v60, %v1767_v5  ;;  %v1189_v38 = vadd.f32 %v1157_v11, %v1092_v26 }
 0x10d   : > { %v3168_v16 = vpop.f32.mrf.mxu0  ;;  %v1285_v40 = vadd.f32 %v1253_v13, %v1188_v23  ;;  %v1446_v49 = vmul.f32 %v3073_v41, %v1124_v54  ;;  %v1254_v52 = vmul.f32 %v3051_v12, %v3201_v34  ;;  %v1737_v55 = vmul.f32 %v3093_v19, %v1125_v10 }
 0x10e   : > { %v1381_v27 = vadd.f32 %v1349_v17, %v1284_v63  ;;  %4371 = vst [vmem:[#allocation11_spill] sm:$0xff] %v3204_v36  ;;  %v1672_v43 = vadd.f32 %v1640_v32, %v1575_v9  ;;  %v607_v45 = vadd.f32 %v2903_v21, %v3168_v16  ;;  %v640_v61 = vadd.f32 %v2903_v21, %v639_v35  ;;  %v1126_v9 = vld [vmem:[#allocation2 + $0xc9] sm:$0xff] }
 0x10f   : > { %v1382_v16 = vadd.f32 %v1350_v42, %v1285_v40  ;;  %v1544_v62 = vmul.f32 %v3076_v48, %v3201_v34  ;;  %v1190_v0 = vadd.f32 %v1158_v20, %v1093_v37  ;;  %v3223_v5 = vadd.f32 %v3112_v60, %v1768_v44 }
 0x110   : > { %v674_v56 = vmax.f32 %v607_v45, 0.0  ;;  %v1769_v2 = vadd.f32 %v1737_v55, %v1672_v43  ;;  %v685_v6 = vmax.f32 %v640_v61, 0.0  ;;  %v1447_v11 = vmul.f32 %v3073_v41, %v1125_v10  ;;  %v3232_v10 = vld [vmem:[#allocation2 + $0xe7] sm:$0xff]  ;;  %v3241_v43 = vpop.f32.mrf.mxu2 }
 0x111   : > { %4372 = vst [vmem:[#allocation12_spill] sm:$0xff] %v3223_v5  ;;  %v1478_v13 = vadd.f32 %v1446_v49, %v1381_v27  ;;  %v1286_v17 = vadd.f32 %v1254_v52, %v1189_v38  ;;  %v4325_v23 = vmax.f32 %v3204_v36, 0.0  ;;  %v1287_v26 = vadd.f32 %v1255_v39, %v1190_v0  ;;  %v1127_v49 = vld [vmem:[#allocation2 + $0xd1] sm:$0xff] }
 0x112   : > { %899 = vst.msk [vmem:[#allocation2 + $0x108] sm:$0xff] %vm811_vm1, %v674_v56  ;;  %v1545_v28 = vmul.f32 %v3076_v48, %v933_v29  ;;  %v1870_v20 = vadd.f32 %v1869_v47, %v1868_v14  ;;  %v1479_v32 = vadd.f32 %v1447_v11, %v1382_v16  ;;  %v3236_v27 = vadd.f32 %v3112_v60, %v1769_v2  ;;  %v935_v52 = vld [vmem:[#allocation2 + $0xef] sm:$0xff] }
 0x113   : > { %910 = vst.msk [vmem:[#allocation2 + $0x1b0] sm:$0xff] %vm811_vm1, %v685_v6  ;;  %v1576_v37 = vadd.f32 %v1544_v62, %v1478_v13  ;;  %v4324_v38 = vmax.f32 %v3223_v5, 0.0  ;;  %v1352_v40 = vmul.f32 %v3063_v31, %v1030_v18  ;;  %v1448_v42 = vmul.f32 %v3073_v41, %v1126_v9 }
 0x114   : > { %4373 = vst [vmem:[#allocation13_spill] sm:$0xff] %v3236_v27  ;;  %v966_v45 = vmul.f32 %v3034_v58, %v933_v29  ;;  %v1063_v47 = vmul.f32 %v3036_v59, %v1030_v18  ;;  %v1577_v55 = vadd.f32 %v1545_v28, %v1479_v32  ;;  %v1738_v39 = vmul.f32 %v3093_v19, %v1126_v9 }
 0x115   : > { %v609_v4 = vpop.f32.mrf.mxu0  ;;  %v1546_v56 = vmul.f32 %v3076_v48, %v3232_v10  ;;  %v1871_v61 = vsel %vm811_vm1, %v4325_v23, 0.0  ;;  %v965_v16 = vmul.f32 %v3034_v58, %v3201_v34  ;;  %v1642_v0 = vmul.f32 %v3086_v7, %v1030_v18  ;;  %v1031_v34 = vld [vmem:[#allocation2 + $0xe8] sm:$0xff] }
 0x116   : > { %v610_v53 = vadd.f32 %v2903_v21, %v609_v4  ;;  %v1029_v4 = vld [vmem:[#allocation2 + $0xc8] sm:$0xff]  ;;  %v1547_v2 = vmul.f32 %v3076_v48, %v935_v52  ;;  %v4323_v6 = vmax.f32 %v3236_v27, 0.0  ;;  %v1873_v11 = vsel %vm811_vm1, %v4324_v38, 0.0 }
 0x117   : > { %v1351_v35 = vmul.f32 %v3063_v31, %v1029_v4  ;;  %v1641_v44 = vmul.f32 %v3086_v7, %v1029_v4  ;;  %v1062_v29 = vmul.f32 %v3036_v59, %v1029_v4  ;;  %v1095_v13 = vadd.f32 %v1063_v47, %v966_v45 }
 0x118   : > { %v675_v63 = vmax.f32 %v610_v53, 0.0  ;;  %v1384_v53 = vadd.f32 %v1352_v40, %v1287_v26  ;;  %v1674_v26 = vadd.f32 %v1642_v0, %v1577_v55  ;;  %v1160_v18 = vmul.f32 %v3041_v1, %v1127_v49  ;;  %v1032_v40 = vld [vmem:[#allocation2 + $0xf0] sm:$0xff]  ;;  %v645_v47 = vpop.f32.mrf.mxu2 }
 0x119   : > { %v1383_v14 = vadd.f32 %v1351_v35, %v1286_v17  ;;  %v1673_v62 = vadd.f32 %v1641_v44, %v1576_v37  ;;  %v1159_v17 = vmul.f32 %v3041_v1, %v1126_v9  ;;  %v1094_v35 = vadd.f32 %v1062_v29, %v965_v16 }
 0x11a   : > { %900 = vst.msk [vmem:[#allocation2 + $0x110] sm:$0xff] %vm811_vm1, %v675_v63  ;;  %v1449_v63 = vmul.f32 %v3073_v41, %v1127_v49  ;;  %v1256_v37 = vmul.f32 %v3051_v12, %v3232_v10  ;;  %v1643_v9 = vmul.f32 %v3086_v7, %v1031_v34  ;;  %v1875_v55 = vsel %vm811_vm1, %v4323_v6, 0.0 }
 0x11b   : > { %v1770_v28 = vadd.f32 %v1738_v39, %v1673_v62  ;;  %v1191_v39 = vadd.f32 %v1159_v17, %v1094_v35  ;;  %v968_v17 = vmul.f32 %v3034_v58, %v935_v52  ;;  %v1354_v35 = vmul.f32 %v3063_v31, %v1032_v40 }
 0x11c   : > { %v1481_v4 = vadd.f32 %v1449_v63, %v1384_v53  ;;  %v1872_v53 = vadd.f32 %v1871_v61, %v1870_v20  ;;  %v693_v63 = vld [vmem:[%s4320_s10 + $0x8] sm:$0xff]  ;;  %v1129_v61 = vld [vmem:[#allocation2 + $0xf1] sm:$0xff] }
 0x11d   : > { %v612_v46 = vpop.f32.mrf.mxu0  ;;  %v3277_v29 = vadd.f32 %v3112_v60, %v1770_v28  ;;  %v1288_v20 = vadd.f32 %v1256_v37, %v1191_v39  ;;  %2529 = vmatpush.msrb.mxu2 %v693_v63  ;;  %712 = vmatpush.msra.mxu1 %v693_v63 }
 0x11e   : > { %v613_v54 = vadd.f32 %v2903_v21, %v612_v46  ;;  %v1579_v44 = vadd.f32 %v1547_v2, %v1481_v4  ;;  %v1874_v0 = vadd.f32 %v1873_v11, %v1872_v53 }
 0x11f   : > { %4374 = vst [vmem:[#allocation14_spill] sm:$0xff] %v3277_v29  ;;  %v4333_v37 = vmax.f32 %v3277_v29, 0.0  ;;  %v2589_v29 = vld [vmem:[%s2806_s29 + $0x18] sm:$0xff] }
 0x120   : > { %v676_v22 = vmax.f32 %v613_v54, 0.0  ;;  %v1480_v54 = vadd.f32 %v1448_v42, %v1383_v14  ;;  %v1257_v42 = vmul.f32 %v3051_v12, %v935_v52  ;;  %v1739_v14 = vmul.f32 %v3093_v19, %v1127_v49 }
 0x121   : > { %v1644_v49 = vmul.f32 %v3086_v7, %v1032_v40  ;;  %v1876_v28 = vadd.f32 %v1875_v55, %v1874_v0  ;;  %v967_v52 = vmul.f32 %v3034_v58, %v3232_v10  ;;  %v1451_v55 = vmul.f32 %v3073_v41, %v1129_v61 }
 0x122   : > { %901 = vst.msk [vmem:[#allocation2 + $0x128] sm:$0xff] %vm811_vm1, %v676_v22  ;;  %v3263_v22 = vld [vmem:[#allocation2 + $0xe9] sm:$0xff]  ;;  %v1578_v32 = vadd.f32 %v1546_v56, %v1480_v54  ;;  %v1192_v56 = vadd.f32 %v1160_v18, %v1095_v13  ;;  %v1771_v16 = vadd.f32 %v1739_v14, %v1674_v26  ;;  %v1065_v13 = vmul.f32 %v3036_v59, %v1032_v40 }
 0x123   : > { %v1740_v45 = vmul.f32 %v3093_v19, %v3263_v22  ;;  %v1676_v4 = vadd.f32 %v1644_v49, %v1579_v44  ;;  %v936_v14 = vld [vmem:[#allocation2 + $0x107] sm:$0xff]  ;;  %v1064_v44 = vmul.f32 %v3036_v59, %v1031_v34  ;;  %v1450_v40 = vmul.f32 %v3073_v41, %v3263_v22 }
 0x124   : > { %v1675_v62 = vadd.f32 %v1643_v9, %v1578_v32  ;;  %v1289_v2 = vadd.f32 %v1257_v42, %v1192_v56  ;;  %v1353_v32 = vmul.f32 %v3063_v31, %v1031_v34  ;;  %v3289_v11 = vadd.f32 %v3112_v60, %v1771_v16  ;;  %v937_v9 = vld [vmem:[#allocation2 + $0x10f] sm:$0xff] }
 0x125   : > { %v615_v46 = vpop.f32.mrf.mxu0  ;;  %v1741_v42 = vmul.f32 %v3093_v19, %v1129_v61  ;;  %v1548_v10 = vmul.f32 %v3076_v48, %v936_v14  ;;  %v1549_v16 = vmul.f32 %v3076_v48, %v937_v9  ;;  %v643_v34 = vadd.f32 %v2903_v21, %v3241_v43 }
 0x126   : > { %v1772_v26 = vadd.f32 %v1740_v45, %v1675_v62  ;;  %v616_v18 = vadd.f32 %v2903_v21, %v615_v46  ;;  %4375 = vst [vmem:[#allocation15_spill] sm:$0xff] %v3289_v11  ;;  %v1385_v45 = vadd.f32 %v1353_v32, %v1288_v20  ;;  %v1386_v53 = vadd.f32 %v1354_v35, %v1289_v2 }
 0x127   : > { %v1097_v46 = vadd.f32 %v1065_v13, %v968_v17  ;;  %v1773_v39 = vadd.f32 %v1741_v42, %v1676_v4  ;;  %v4331_v49 = vmax.f32 %v3289_v11, 0.0  ;;  %v1877_v63 = vsel %vm811_vm1, %v4333_v37, 0.0  ;;  %v3312_v17 = vpop.f32.mrf.mxu2  ;;  %v1034_v42 = vld [vmem:[#allocation2 + $0x110] sm:$0xff] }
 0x128   : > { %v3300_v56 = vadd.f32 %v3112_v60, %v1772_v26  ;;  %v677_v62 = vmax.f32 %v616_v18, 0.0  ;;  %v646_v20 = vadd.f32 %v2903_v21, %v645_v47  ;;  %v1482_v13 = vadd.f32 %v1450_v40, %v1385_v45  ;;  %v1033_v18 = vld [vmem:[#allocation2 + $0x108] sm:$0xff] }
 0x129   : > { %v1483_v4 = vadd.f32 %v1451_v55, %v1386_v53  ;;  %v686_v26 = vmax.f32 %v643_v34, 0.0  ;;  %v3317_v32 = vadd.f32 %v3112_v60, %v1773_v39  ;;  %v1096_v38 = vadd.f32 %v1064_v44, %v967_v52 }
 0x12a   : > { %4376 = vst [vmem:[#allocation16_spill] sm:$0xff] %v3300_v56  ;;  %v4329_v35 = vmax.f32 %v3300_v56, 0.0  ;;  %v687_v47 = vmax.f32 %v646_v20, 0.0  ;;  %v1580_v23 = vadd.f32 %v1548_v10, %v1482_v13  ;;  %v1878_v53 = vadd.f32 %v1877_v63, %v1876_v28 }
 0x12b   : > { %902 = vst.msk [vmem:[#allocation2 + $0x130] sm:$0xff] %vm811_vm1, %v677_v62  ;;  %v1581_v24 = vadd.f32 %v1549_v16, %v1483_v4  ;;  %v1162_v40 = vmul.f32 %v3041_v1, %v1129_v61  ;;  %v1259_v55 = vmul.f32 %v3051_v12, %v937_v9  ;;  %v1879_v39 = vsel %vm811_vm1, %v4331_v49, 0.0  ;;  %v1131_v16 = vld [vmem:[#allocation2 + $0x111] sm:$0xff] }
 0x12c   : > { %4377 = vst [vmem:[#allocation17_spill] sm:$0xff] %v3317_v32  ;;  %v1645_v52 = vmul.f32 %v3086_v7, %v1033_v18  ;;  %v1646_v44 = vmul.f32 %v3086_v7, %v1034_v42  ;;  %v1881_v61 = vsel %vm811_vm1, %v4329_v35, 0.0  ;;  %v970_v34 = vmul.f32 %v3034_v58, %v937_v9 }
 0x12d   : > { %v618_v54 = vpop.f32.mrf.mxu0  ;;  %911 = vst.msk [vmem:[#allocation2 + $0x1c8] sm:$0xff] %vm811_vm1, %v686_v26  ;;  %v1194_v28 = vadd.f32 %v1162_v40, %v1097_v46  ;;  %v1067_v63 = vmul.f32 %v3036_v59, %v1034_v42  ;;  %v1880_v20 = vadd.f32 %v1879_v39, %v1878_v53  ;;  %v969_v4 = vmul.f32 %v3034_v58, %v936_v14  ;;  %v938_v40 = vld [vmem:[#allocation2 + $0x127] sm:$0xff] }
 0x12e   : > { %v619_v0 = vadd.f32 %v2903_v21, %v618_v54  ;;  %v1130_v54 = vld [vmem:[#allocation2 + $0x109] sm:$0xff]  ;;  %912 = vst.msk [vmem:[#allocation2 + $0x1d0] sm:$0xff] %vm811_vm1, %v687_v47  ;;  %v1677_v62 = vadd.f32 %v1645_v52, %v1580_v23  ;;  %v1066_v26 = vmul.f32 %v3036_v59, %v1033_v18 }
 0x12f   : > { %v1742_v10 = vmul.f32 %v3093_v19, %v1130_v54  ;;  %v1291_v46 = vadd.f32 %v1259_v55, %v1194_v28  ;;  %v1882_v23 = vadd.f32 %v1881_v61, %v1880_v20  ;;  %v3350_v53 = vpop.f32.mrf.mxu2  ;;  %v1163_v55 = vmul.f32 %v3041_v1, %v1130_v54 }
 0x130   : > { %v678_v6 = vmax.f32 %v619_v0, 0.0  ;;  %v1678_v0 = vadd.f32 %v1646_v44, %v1581_v24  ;;  %v971_v28 = vmul.f32 %v3034_v58, %v938_v40 }
 0x131   : > { %v1774_v47 = vadd.f32 %v1742_v10, %v1677_v62  ;;  %v1452_v10 = vmul.f32 %v3073_v41, %v1130_v54  ;;  %v1098_v62 = vadd.f32 %v1066_v26, %v969_v4  ;;  %v1044_v4 = vld [vmem:[#allocation2 + $0x1b0] sm:$0xff] }
 0x132   : > { %903 = vst.msk [vmem:[#allocation2 + $0x148] sm:$0xff] %vm811_vm1, %v678_v6  ;;  %v1258_v6 = vmul.f32 %v3051_v12, %v936_v14  ;;  %v1099_v14 = vadd.f32 %v1067_v63, %v970_v34  ;;  %v939_v52 = vld [vmem:[#allocation2 + $0x12f] sm:$0xff]  ;;  %v1453_v63 = vmul.f32 %v3073_v41, %v1131_v16  ;;  %v3400_v49 = vmul.f32 %v3086_v7, %v1044_v4 }
 0x133   : > { %v1261_v20 = vmul.f32 %v3051_v12, %v939_v52  ;;  %v1141_v26 = vld [vmem:[#allocation2 + $0x1b1] sm:$0xff] }
 0x134   : > { %4380 = vst [vmem:[#allocation20_spill] sm:$0xff] %v3400_v49 }
 0x135   : > { %v621_v2 = vpop.f32.mrf.mxu0 }
 0x136   : > { %v622_v43 = vadd.f32 %v2903_v21, %v621_v2  ;;  %v1161_v21 = vmul.f32 %v3041_v1, %v3263_v22  ;;  %v4327_v22 = vmax.f32 %v3317_v32, 0.0 }
 0x138   : > { %v679_v45 = vmax.f32 %v622_v43, 0.0  ;;  %v1193_v2 = vadd.f32 %v1161_v21, %v1096_v38  ;;  %v1743_v43 = vmul.f32 %v3093_v19, %v1131_v16  ;;  %v1883_v9 = vsel %vm811_vm1, %v4327_v22, 0.0 }
 0x139   : > { %v1356_v38 = vmul.f32 %v3063_v31, %v1034_v42  ;;  %v1355_v21 = vmul.f32 %v3063_v31, %v1033_v18  ;;  %v3359_v42 = vadd.f32 %v3112_v60, %v1774_v47  ;;  %v1260_v18 = vmul.f32 %v3051_v12, %v938_v40 }
 0x13a   : > { %904 = vst.msk [vmem:[#allocation2 + $0x150] sm:$0xff] %vm811_vm1, %v679_v45  ;;  %v1035_v45 = vld [vmem:[#allocation2 + $0x128] sm:$0xff]  ;;  %v1290_v24 = vadd.f32 %v1258_v6, %v1193_v2  ;;  %v1775_v39 = vadd.f32 %v1743_v43, %v1678_v0  ;;  %v1164_v6 = vmul.f32 %v3041_v1, %v1131_v16  ;;  %v1550_v0 = vmul.f32 %v3076_v48, %v938_v40 }
 0x13b   : > { %v1388_v44 = vadd.f32 %v1356_v38, %v1291_v46  ;;  %v1068_v61 = vmul.f32 %v3036_v59, %v1035_v45  ;;  %4378 = vst [vmem:[#allocation18_spill] sm:$0xff] %v3359_v42  ;;  %v1884_v54 = vadd.f32 %v1883_v9, %v1882_v23  ;;  %v1195_v2 = vadd.f32 %v1163_v55, %v1098_v62 }
 0x13c   : > { %v1387_v34 = vadd.f32 %v1355_v21, %v1290_v24  ;;  %v1196_v46 = vadd.f32 %v1164_v6, %v1099_v14  ;;  %v3366_v43 = vadd.f32 %v3112_v60, %v1775_v39  ;;  %v1357_v8 = vmul.f32 %v3063_v31, %v1035_v45  ;;  %v1036_v24 = vld [vmem:[#allocation2 + $0x130] sm:$0xff] }
 0x13d   : > { %v3341_v13 = vpop.f32.mrf.mxu0  ;;  %v1485_v47 = vadd.f32 %v1453_v63, %v1388_v44  ;;  %v1100_v22 = vadd.f32 %v1068_v61, %v971_v28  ;;  %v1132_v21 = vld [vmem:[#allocation2 + $0x129] sm:$0xff]  ;;  %v4338_v40 = vmax.f32 %v3359_v42, 0.0  ;;  %v1292_v35 = vadd.f32 %v1260_v18, %v1195_v2  ;;  %v1133_v2 = vld [vmem:[#allocation2 + $0x131] sm:$0xff] }
 0x13e   : > { %4379 = vst [vmem:[#allocation19_spill] sm:$0xff] %v3366_v43  ;;  %v1484_v38 = vadd.f32 %v1452_v10, %v1387_v34  ;;  %v1647_v23 = vmul.f32 %v3086_v7, %v1035_v45  ;;  %v1551_v9 = vmul.f32 %v3076_v48, %v939_v52  ;;  %v3375_v55 = vmul.f32 %v3036_v59, %v1044_v4  ;;  %v3380_v10 = vld [vmem:[#allocation2 + $0x147] sm:$0xff] }
 0x13f   : > { %v3378_v39 = vmul.f32 %v3041_v1, %v1141_v26  ;;  %v1293_v44 = vadd.f32 %v1261_v20, %v1196_v46  ;;  %v4337_v28 = vmax.f32 %v3366_v43, 0.0  ;;  %v972_v61 = vmul.f32 %v3034_v58, %v939_v52 }
 0x140   : > { %v1582_v14 = vadd.f32 %v1550_v0, %v1484_v38  ;;  %v1069_v62 = vmul.f32 %v3036_v59, %v1036_v24  ;;  %v1454_v45 = vmul.f32 %v3073_v41, %v1132_v21  ;;  %v3387_v6 = vmul.f32 %v3063_v31, %v1044_v4  ;;  %v654_v0 = vpop.f32.mrf.mxu2 }
 0x141   : > { %v3390_v18 = vmul.f32 %v3073_v41, %v1141_v26  ;;  %v1358_v34 = vmul.f32 %v3063_v31, %v1036_v24  ;;  %v1744_v63 = vmul.f32 %v3093_v19, %v1132_v21  ;;  %v1885_v20 = vsel %vm811_vm1, %v4338_v40, 0.0  ;;  %v2583_v40 = vld [vmem:[%s2806_s29] sm:$0xff] }
 0x142   : > { %v1389_v52 = vadd.f32 %v1357_v8, %v1292_v35  ;;  %v1583_v46 = vadd.f32 %v1551_v9, %v1485_v47  ;;  %v1552_v38 = vmul.f32 %v3076_v48, %v3380_v10  ;;  %v1679_v51 = vadd.f32 %v1647_v23, %v1582_v14  ;;  %v3407_v35 = vld [vmem:[#allocation2 + $0x14f] sm:$0xff]  ;;  %v3413_v14 = vld [vmem:[#allocation2 + $0x1c7] sm:$0xff] }
 0x143   : > { %v1165_v25 = vmul.f32 %v3041_v1, %v1132_v21  ;;  %v1390_v37 = vadd.f32 %v1358_v34, %v1293_v44  ;;  %v1887_v33 = vsel %vm811_vm1, %v4337_v28, 0.0  ;;  %v1101_v27 = vadd.f32 %v1069_v62, %v972_v61  ;;  %v3415_v21 = vld [vmem:[#allocation2 + $0x148] sm:$0xff] }
 0x144   : > { %v1486_v5 = vadd.f32 %v1454_v45, %v1389_v52  ;;  %v1648_v8 = vmul.f32 %v3086_v7, %v1036_v24  ;;  %v1886_v47 = vadd.f32 %v1885_v20, %v1884_v54  ;;  %v3410_v9 = vmul.f32 %v3093_v19, %v1141_v26  ;;  %v3418_v24 = vld [vmem:[#allocation2 + $0x150] sm:$0xff]  ;;  %v3425_v54 = vld [vmem:[%s4312_s2] ss:$0 sm:$0xff] }
 0x145   : > { %v3369_v16 = vpop.f32.mrf.mxu0  ;;  %v1455_v4 = vmul.f32 %v3073_v41, %v1133_v2  ;;  %v1776_v23 = vadd.f32 %v1744_v63, %v1679_v51  ;;  %v1166_v34 = vmul.f32 %v3041_v1, %v1133_v2  ;;  %v3420_v45 = vld [vmem:[#allocation2 + $0x149] sm:$0xff]  ;;  %v649_v51 = vadd.f32 %v3425_v54, %v3312_v17  ;;  %v692_v26 = vld [vmem:[%s4320_s10] sm:$0xff] }
 0x146   : > { %4381 = vst [vmem:[#allocation21_spill] sm:$0xff] %v3410_v9  ;;  %v1680_v61 = vadd.f32 %v1648_v8, %v1583_v46  ;;  %v1584_v62 = vadd.f32 %v1552_v38, %v1486_v5  ;;  %v3432_v63 = vadd.f32 %v1887_v33, %v1886_v47  ;;  %v3434_v20 = vadd.f32 %v1165_v25, %v1100_v22  ;;  %v2582_v8 = vld [vmem:[%s2806_s29 + $0xc8] sm:$0xff]  ;;  %v3452_v22 = vld [vmem:[#allocation2 + $0x151] sm:$0xff] }
 0x147   : > { %v1487_v5 = vadd.f32 %v1455_v4, %v1390_v37  ;;  %v1553_v52 = vmul.f32 %v3076_v48, %v3407_v35  ;;  %2530 = vmatpush.msrb.mxu2 %v692_v26  ;;  %v3438_v46 = vadd.f32 %v1166_v34, %v1101_v27  ;;  %v1745_v38 = vmul.f32 %v3093_v19, %v1133_v2  ;;  %v1045_v37 = vld [vmem:[#allocation2 + $0x1c8] sm:$0xff] }
 0x148   : > { %v3443_v17 = vmul.f32 %v3034_v58, %v3413_v14  ;;  %v1649_v33 = vmul.f32 %v3086_v7, %v3415_v21  ;;  %2479 = vmatmul.msk.f32.vlgmr.msrb.gmra.mxu2 %vm450_vm0, %v2582_v8  ;;  %v3450_v25 = vadd.f32 %v3112_v60, %v1776_v23  ;;  %v1650_v2 = vmul.f32 %v3086_v7, %v3418_v24  ;;  %v657_v36 = vpop.f32.mrf.mxu2 }
 0x149   : > { %v1585_v27 = vadd.f32 %v1553_v52, %v1487_v5  ;;  %v1746_v47 = vmul.f32 %v3093_v19, %v3420_v45  ;;  %713 = vmatpush.msra.mxu1 %v692_v26  ;;  %v1777_v4 = vadd.f32 %v1745_v38, %v1680_v61  ;;  %v688_v28 = vmax.f32 %v649_v51, 0.0 }
 0x14a   : > { %4382 = vst [vmem:[#allocation22_spill] sm:$0xff] %v3450_v25  ;;  %v1681_v34 = vadd.f32 %v1649_v33, %v1584_v62  ;;  %v625_v8 = vadd.f32 %v3425_v54, %v3341_v13  ;;  %2454 = vmatmul.msk.f32.vlgmr.msra.gmra.mxu1 %vm450_vm0, %v2583_v40  ;;  %v652_v5 = vadd.f32 %v3425_v54, %v3350_v53 }
 0x14b   : > { %v1682_v23 = vadd.f32 %v1650_v2, %v1585_v27  ;;  %v628_v52 = vadd.f32 %v3425_v54, %v3369_v16  ;;  %v655_v43 = vadd.f32 %v3425_v54, %v654_v0  ;;  %v1078_v61 = vmul.f32 %v3036_v59, %v1045_v37  ;;  %913 = vst.msk [vmem:[#allocation2 + $0x1e8] sm:$0xff] %vm811_vm1, %v688_v28 }
 0x14c   : > { %v1747_v62 = vmul.f32 %v3093_v19, %v3452_v22  ;;  %v680_v13 = vmax.f32 %v625_v8, 0.0  ;;  %v1778_v51 = vadd.f32 %v1746_v47, %v1681_v34  ;;  %v689_v26 = vmax.f32 %v652_v5, 0.0  ;;  %v949_v47 = vld [vmem:[#allocation2 + $0x1cf] sm:$0xff] }
 0x14d   : > { %v630_v44 = vpop.f32.mrf.mxu0  ;;  %v681_v38 = vmax.f32 %v628_v52, 0.0  ;;  %v690_v53 = vmax.f32 %v655_v43, 0.0  ;;  %v1262_v16 = vmul.f32 %v3051_v12, %v3380_v10  ;;  %v658_v27 = vadd.f32 %v3425_v54, %v657_v36  ;;  %v1046_v5 = vld [vmem:[#allocation2 + $0x1d0] sm:$0xff] }
 0x14e   : > { %v631_v40 = vadd.f32 %v3425_v54, %v630_v44  ;;  %905 = vst.msk [vmem:[#allocation2 + $0x168] sm:$0xff] %vm811_vm1, %v680_v13  ;;  %v3478_v28 = vadd.f32 %v3112_v60, %v1777_v4  ;;  %v4341_v44 = vmax.f32 %v3450_v25, 0.0  ;;  %v3483_v43 = vmul.f32 %v3051_v12, %v3413_v14  ;;  %v2584_v13 = vld [vmem:[%s2806_s29 + $0xd0] sm:$0xff] }
 0x14f   : > { %v1779_v34 = vadd.f32 %v1747_v62, %v1682_v23  ;;  %914 = vst.msk [vmem:[#allocation2 + $0x1f0] sm:$0xff] %vm811_vm1, %v689_v26  ;;  %v973_v8 = vmul.f32 %v3034_v58, %v3380_v10  ;;  %v1070_v36 = vmul.f32 %v3036_v59, %v3415_v21  ;;  %v691_v4 = vmax.f32 %v658_v27, 0.0  ;;  %v1142_v10 = vld [vmem:[#allocation2 + $0x1c9] sm:$0xff] }
 0x150   : > { %v682_v0 = vmax.f32 %v631_v40, 0.0  ;;  %4383 = vst [vmem:[#allocation23_spill] sm:$0xff] %v3478_v28  ;;  %2480 = vmatmul.msk.f32.gmra.mxu2 %vm450_vm0, %v2584_v13  ;;  %v3494_v40 = vmul.f32 %v3063_v31, %v1045_v37  ;;  %v3498_v23 = vmul.f32 %v3076_v48, %v3413_v14  ;;  %v1263_v62 = vmul.f32 %v3051_v12, %v3407_v35  ;;  %v2585_v14 = vld [vmem:[%s2806_s29 + $0x8] sm:$0xff]  ;;  %v3519_v13 = vld [vmem:[#allocation2 + $0x1d1] sm:$0xff] }
 0x151   : > { %906 = vst.msk [vmem:[#allocation2 + $0x170] sm:$0xff] %vm811_vm1, %v681_v38  ;;  %v3503_v26 = vadd.f32 %v3112_v60, %v1778_v51  ;;  %v3507_v38 = vmul.f32 %v3086_v7, %v1045_v37  ;;  %v982_v27 = vmul.f32 %v3034_v58, %v949_v47  ;;  %v1889_v51 = vsel %vm811_vm1, %v4341_v44, 0.0 }
 0x152   : > { %4384 = vst [vmem:[#allocation24_spill] sm:$0xff] %v3498_v23  ;;  %2455 = vmatmul.msk.f32.gmra.mxu1 %vm450_vm0, %v2585_v14  ;;  %v3522_v37 = vadd.f32 %v3112_v60, %v1779_v34  ;;  %v1175_v14 = vmul.f32 %v3041_v1, %v1142_v10  ;;  %v974_v44 = vmul.f32 %v3034_v58, %v3407_v35  ;;  %v3595_v32 = vld [vmem:[#allocation2 + $0x1e8] sm:$0xff] }
 0x153   : > { %4385 = vst [vmem:[#allocation25_spill] sm:$0xff] %v3503_v26  ;;  %v1295_v60 = vadd.f32 %v1263_v62, %v3438_v46  ;;  %v4344_v34 = vmax.f32 %v3503_v26, 0.0  ;;  %v3567_v46 = vmul.f32 %v3073_v41, %v3519_v13  ;;  %v3573_v25 = vmul.f32 %v3086_v7, %v1046_v5 }
 0x154   : > { %915 = vst.msk [vmem:[#allocation2 + $0x208] sm:$0xff] %vm811_vm1, %v690_v53  ;;  %v1079_v53 = vmul.f32 %v3036_v59, %v1046_v5 }
 0x155   : > { %v633_v33 = vpop.f32.mrf.mxu0  ;;  %4386 = vst [vmem:[#allocation26_spill] sm:$0xff] %v3507_v38 }
 0x156   : > { %v634_v2 = vadd.f32 %v3425_v54, %v633_v33  ;;  %v1294_v33 = vadd.f32 %v1262_v16, %v3434_v20  ;;  %907 = vst.msk [vmem:[#allocation2 + $0x188] sm:$0xff] %vm811_vm1, %v682_v0  ;;  %v1110_v20 = vadd.f32 %v1078_v61, %v3443_v17  ;;  %v1102_v16 = vadd.f32 %v1070_v36, %v973_v8 }
 0x157   : > { %4387 = vst [vmem:[#allocation27_spill] sm:$0xff] %v3519_v13  ;;  %v1359_v0 = vmul.f32 %v3063_v31, %v3415_v21  ;;  %v1890_v17 = vadd.f32 %v1889_v51, %v3432_v63  ;;  %v1176_v21 = vmul.f32 %v3041_v1, %v3519_v13  ;;  %v3540_v8 = vmul.f32 %v3051_v12, %v949_v47 }
 0x158   : > { %v683_v52 = vmax.f32 %v634_v2, 0.0  ;;  %4388 = vst [vmem:[#allocation28_spill] sm:$0xff] %v3522_v37  ;;  %v1071_v2 = vmul.f32 %v3036_v59, %v3418_v24  ;;  %v4389_v36 = vmax.f32 %v3478_v28, 0.0  ;;  %v3548_v62 = vadd.f32 %v1175_v14, %v1110_v20  ;;  %v943_v26 = vld [vmem:[#allocation2 + $0x16f] sm:$0xff] }
 0x159   : > { %916 = vst.msk [vmem:[#allocation2 + $0x210] sm:$0xff] %vm811_vm1, %v691_v4  ;;  %v1391_v61 = vadd.f32 %v1359_v0, %v1294_v33  ;;  %v1111_v4 = vadd.f32 %v1079_v53, %v982_v27  ;;  %v3551_v63 = vmul.f32 %v3063_v31, %v1046_v5  ;;  %v3554_v33 = vmul.f32 %v3073_v41, %v1142_v10  ;;  %v942_v0 = vld [vmem:[#allocation2 + $0x167] sm:$0xff]  ;;  %v1137_v11 = vld [vmem:[#allocation2 + $0x171] sm:$0xff] }
 0x15a   : > { %908 = vst.msk [vmem:[#allocation2 + $0x190] sm:$0xff] %vm811_vm1, %v683_v52  ;;  %v1891_v35 = vsel %vm811_vm1, %v4389_v36, 0.0  ;;  %v1360_v52 = vmul.f32 %v3063_v31, %v3418_v24  ;;  %v1167_v51 = vmul.f32 %v3041_v1, %v3420_v45  ;;  %v2586_v36 = vld [vmem:[%s2806_s29 + $0xd8] sm:$0xff]  ;;  %v1103_v27 = vadd.f32 %v1071_v2, %v974_v44  ;;  %v2587_v44 = vld [vmem:[%s2806_s29 + $0x10] sm:$0xff] }
 0x15b   : > { %4390 = vst [vmem:[#allocation29_spill] sm:$0xff] %v3554_v33  ;;  %2481 = vmatmul.msk.f32.gmra.mxu2 %vm450_vm0, %v2586_v36  ;;  %v1456_v53 = vmul.f32 %v3073_v41, %v3420_v45  ;;  %v1893_v20 = vsel %vm811_vm1, %v4344_v34, 0.0  ;;  %v1892_v14 = vadd.f32 %v1891_v35, %v1890_v17  ;;  %v3570_v28 = vmul.f32 %v3076_v48, %v949_v47  ;;  %v950_v35 = vld [vmem:[#allocation2 + $0x1e7] sm:$0xff] }
 0x15c   : > { %v1392_v24 = vadd.f32 %v1360_v52, %v1295_v60  ;;  %4391 = vst [vmem:[#allocation30_spill] sm:$0xff] %v3567_v46  ;;  %2456 = vmatmul.msk.f32.gmra.mxu1 %vm450_vm0, %v2587_v44  ;;  %v1168_v45 = vmul.f32 %v3041_v1, %v3452_v22  ;;  %v1457_v2 = vmul.f32 %v3073_v41, %v3452_v22  ;;  %v4394_v60 = vmax.f32 %v3522_v37, 0.0  ;;  %v1039_v52 = vld [vmem:[#allocation2 + $0x168] sm:$0xff]  ;;  %v1935_v22 = vld [vmem:[%s4315_s5 + $0x18] sm:$0xff] }
 0x15d   : > { %4392 = vst [vmem:[#allocation31_spill] sm:$0xff] %v3570_v28  ;;  %v1554_v47 = vmul.f32 %v3076_v48, %v942_v0  ;;  %v3586_v5 = vmul.f32 %v3093_v19, %v1142_v10  ;;  %v1199_v36 = vadd.f32 %v1167_v51, %v1102_v16  ;;  %v1894_v34 = vadd.f32 %v1893_v20, %v1892_v14  ;;  %v1040_v10 = vld [vmem:[#allocation2 + $0x170] sm:$0xff] }
 0x15e   : > { %4393 = vst [vmem:[#allocation32_spill] sm:$0xff] %v3573_v25  ;;  %v1895_v17 = vsel %vm811_vm1, %v4394_v60, 0.0  ;;  %v1264_v44 = vmul.f32 %v3051_v12, %v942_v0  ;;  %v1934_v60 = vld [vmem:[%s4315_s5 + $0x10] sm:$0xff]  ;;  %v1200_v37 = vadd.f32 %v1168_v45, %v1103_v27  ;;  %v1488_v42 = vadd.f32 %v1456_v53, %v1391_v61  ;;  %1952 = vmatpush.msra.mxu2 %v1935_v22 }
 0x15f   : > { %4395 = vst [vmem:[#allocation33_spill] sm:$0xff] %v3586_v5  ;;  %v1489_v57 = vadd.f32 %v1457_v2, %v1392_v24  ;;  %v3597_v16 = vadd.f32 %v1176_v21, %v1111_v4  ;;  %v3599_v51 = vadd.f32 %v1895_v17, %v1894_v34  ;;  %v3602_v20 = vmul.f32 %v3034_v58, %v950_v35  ;;  %v1136_v61 = vld [vmem:[#allocation2 + $0x169] sm:$0xff] }
 0x160   : > { %4396 = vst [vmem:[#allocation34_spill] sm:$0xff] %v3595_v32  ;;  %v3606_v14 = vmul.f32 %v3036_v59, %v3595_v32  ;;  %v3609_v27 = vmul.f32 %v3051_v12, %v950_v35  ;;  %v1933_v24 = vld [vmem:[%s4315_s5 + $0x8] sm:$0xff]  ;;  %v975_v21 = vmul.f32 %v3034_v58, %v942_v0  ;;  %v1072_v34 = vmul.f32 %v3036_v59, %v1039_v52  ;;  %v1932_v0 = vld [vmem:[%s4315_s5] sm:$0xff] }
 0x161   : > { %4397 = vst [vmem:[#allocation35_spill] sm:$0xff] %v3599_v51  ;;  %v1586_v4 = vadd.f32 %v1554_v47, %v1488_v42  ;;  %v1265_v53 = vmul.f32 %v3051_v12, %v943_v26  ;;  %1953 = vmatpush.msra.mxu2 %v1934_v60  ;;  %v1296_v45 = vadd.f32 %v1264_v44, %v1199_v36  ;;  %v3633_v44 = vld [vmem:[#allocation2 + $0x1ef] sm:$0xff]  ;;  %v944_v5 = vld [vmem:[#allocation2 + $0x187] sm:$0xff] }
 0x162   : > { %v976_v2 = vmul.f32 %v3034_v58, %v943_v26  ;;  %v1073_v17 = vmul.f32 %v3036_v59, %v1040_v10  ;;  %v1555_v22 = vmul.f32 %v3076_v48, %v943_v26  ;;  %v3627_v42 = vmul.f32 %v3063_v31, %v3595_v32  ;;  %4399 = vst [vmem:[#allocation37_spill] sm:$0xff] %v3633_v44  ;;  %v3635_v26 = vld [vmem:[#allocation2 + $0x1f0] sm:$0xff] }
 0x163   : > { %2482 = vmatmul.msk.f32.gmra.mxu2 %vm450_vm0, %v2588_v50  ;;  %v3630_v47 = vmul.f32 %v3076_v48, %v950_v35  ;;  %v1651_v36 = vmul.f32 %v3086_v7, %v1039_v52  ;;  %v1748_v60 = vmul.f32 %v3093_v19, %v1136_v61  ;;  %v1361_v50 = vmul.f32 %v3063_v31, %v1039_v52  ;;  %v3647_v35 = vld [vmem:[#allocation2 + $0x1e9] sm:$0xff]  ;;  %v1139_v49 = vld [vmem:[#allocation2 + $0x191] sm:$0xff] }
 0x164   : > { %1954 = vmatpush.msra.mxu2 %v1933_v24  ;;  %v3641_v56 = vmul.f32 %v3034_v58, %v3633_v44  ;;  %v3645_v30 = vmul.f32 %v3036_v59, %v3635_v26  ;;  %v1169_v3 = vmul.f32 %v3041_v1, %v1136_v61  ;;  %2457 = vmatmul.msk.f32.gmra.mxu1 %vm450_vm0, %v2589_v29  ;;  %v945_v13 = vld [vmem:[#allocation2 + $0x18f] sm:$0xff] }
 0x165   : > { %4398 = vst [vmem:[#allocation36_spill] sm:$0xff] %v3630_v47  ;;  %v1104_v15 = vadd.f32 %v1072_v34, %v975_v21  ;;  %v1683_v24 = vadd.f32 %v1651_v36, %v1586_v4  ;;  %v3654_v52 = vmul.f32 %v3041_v1, %v3647_v35  ;;  %v1297_v51 = vadd.f32 %v1265_v53, %v1200_v37  ;;  %v1041_v47 = vld [vmem:[#allocation2 + $0x188] sm:$0xff]  ;;  %v636_v37 = vpop.f32.mrf.mxu0  ;;  %v1042_v36 = vld [vmem:[#allocation2 + $0x190] sm:$0xff] }
 0x166   : > { %1955 = vmatpush.msra.mxu2 %v1932_v0  ;;  %v1393_v9 = vadd.f32 %v1361_v50, %v1296_v45  ;;  %v3658_v25 = vmul.f32 %v3051_v12, %v3633_v44  ;;  %v1105_v32 = vadd.f32 %v1073_v17, %v976_v2  ;;  %v1587_v38 = vadd.f32 %v1555_v22, %v1489_v57 }
 0x167   : > { %v1170_v29 = vmul.f32 %v3041_v1, %v1137_v11  ;;  %v1362_v21 = vmul.f32 %v3063_v31, %v1040_v10  ;;  %v1458_v34 = vmul.f32 %v3073_v41, %v1136_v61  ;;  %v1780_v4 = vadd.f32 %v1748_v60, %v1683_v24 }
 0x168   : > { %v1201_v53 = vadd.f32 %v1169_v3, %v1104_v15  ;;  %v1652_v0 = vmul.f32 %v3086_v7, %v1040_v10  ;;  %v1266_v45 = vmul.f32 %v3051_v12, %v944_v5  ;;  %v1267_v50 = vmul.f32 %v3051_v12, %v945_v13  ;;  %v2590_v15 = vld [vmem:[%s2806_s29 + $0xe8] sm:$0xff] }
 0x169   : > { %v1394_v2 = vadd.f32 %v1362_v21, %v1297_v51  ;;  %v1459_v57 = vmul.f32 %v3073_v41, %v1137_v11  ;;  %v977_v17 = vmul.f32 %v3034_v58, %v944_v5  ;;  %v1074_v22 = vmul.f32 %v3036_v59, %v1041_v47  ;;  %v3676_v51 = vld [vmem:[%s4314_s4] ss:$0 sm:$0xff] }
 0x16a   : > { %v1202_v44 = vadd.f32 %v1170_v29, %v1105_v32  ;;  %v1684_v61 = vadd.f32 %v1652_v0, %v1587_v38  ;;  %v1556_v60 = vmul.f32 %v3076_v48, %v944_v5  ;;  %v637_v3 = vadd.f32 %v3425_v54, %v636_v37  ;;  %v1138_v29 = vld [vmem:[#allocation2 + $0x189] sm:$0xff]  ;;  %v2592_v0 = vld [vmem:[%s2806_s29 + $0x20] sm:$0xff] }
 0x16b   : > { %2483 = vmatmul.msk.f32.gmra.mxu2 %vm450_vm0, %v2590_v15  ;;  %v1490_v10 = vadd.f32 %v1458_v34, %v1393_v9  ;;  %v3679_v24 = vadd.f32 %v3676_v51, %v1780_v4  ;;  %v978_v32 = vmul.f32 %v3034_v58, %v945_v13  ;;  %v1075_v38 = vmul.f32 %v3036_v59, %v1042_v36 }
 0x16c   : > { %v1749_v5 = vmul.f32 %v3093_v19, %v1137_v11  ;;  %v1298_v54 = vadd.f32 %v1266_v45, %v1201_v53  ;;  %v1299_v21 = vadd.f32 %v1267_v50, %v1202_v44  ;;  %v684_v37 = vmax.f32 %v637_v3, 0.0  ;;  %2458 = vmatmul.msk.f32.gmra.mxu1 %vm450_vm0, %v2592_v0  ;;  %v3694_v50 = vld [vmem:[#allocation2 + $0x1f1] sm:$0xff] }
 0x16d   : > { %v1491_v9 = vadd.f32 %v1459_v57, %v1394_v2  ;;  %v1106_v34 = vadd.f32 %v1074_v22, %v977_v17  ;;  %v1363_v15 = vmul.f32 %v3063_v31, %v1041_v47  ;;  %v1557_v4 = vmul.f32 %v3076_v48, %v945_v13 }
 0x16e   : > { %v1781_v46 = vadd.f32 %v1749_v5, %v1684_v61  ;;  %v1588_v28 = vadd.f32 %v1556_v60, %v1490_v10  ;;  %v1171_v23 = vmul.f32 %v3041_v1, %v1138_v29  ;;  %v1364_v33 = vmul.f32 %v3063_v31, %v1042_v36  ;;  %909 = vst.msk [vmem:[#allocation2 + $0x1a8] sm:$0xff] %vm811_vm1, %v684_v37  ;;  %v3719_v5 = vld [vmem:[#allocation2 + $0x20f] sm:$0xff] }
 0x16f   : > { %v1848_v11 = vmax.f32 %v3679_v24, 0.0  ;;  %v1653_v44 = vmul.f32 %v3086_v7, %v1041_v47  ;;  %v1107_v53 = vadd.f32 %v1075_v38, %v978_v32  ;;  %v1460_v45 = vmul.f32 %v3073_v41, %v1138_v29  ;;  %v2593_v38 = vld [vmem:[%s2806_s29 + $0xf0] sm:$0xff] }
 0x170   : > { %v1395_v2 = vadd.f32 %v1363_v15, %v1298_v54  ;;  %v1172_v13 = vmul.f32 %v3041_v1, %v1139_v49  ;;  %v1396_v57 = vadd.f32 %v1364_v33, %v1299_v21  ;;  %v1750_v17 = vmul.f32 %v3093_v19, %v1138_v29  ;;  %v2594_v21 = vld [vmem:[%s2806_s29 + $0x28] sm:$0xff] }
 0x171   : > { %v1589_v22 = vadd.f32 %v1557_v4, %v1491_v9  ;;  %v1112_v61 = vadd.f32 %v3606_v14, %v3602_v20  ;;  %v1113_v60 = vadd.f32 %v3645_v30, %v3641_v56  ;;  %v1178_v47 = vmul.f32 %v3041_v1, %v3694_v50  ;;  %v3715_v30 = vld [vmem:[#allocation2 + $0x207] sm:$0xff] }
 0x172   : > { %v3705_v3 = vadd.f32 %v3676_v51, %v1781_v46  ;;  %v1685_v10 = vadd.f32 %v1653_v44, %v1588_v28  ;;  %v1203_v32 = vadd.f32 %v1171_v23, %v1106_v34  ;;  %v1461_v33 = vmul.f32 %v3073_v41, %v1139_v49 }
 0x173   : > { %2484 = vmatmul.msk.f32.gmra.mxu2 %vm450_vm0, %v2593_v38  ;;  %v3713_v20 = vsel %vm811_vm1, %v1848_v11, 0.0  ;;  %v1204_v56 = vadd.f32 %v1172_v13, %v1107_v53  ;;  %v1492_v14 = vadd.f32 %v1460_v45, %v1395_v2  ;;  %v1654_v46 = vmul.f32 %v3086_v7, %v1042_v36 }
 0x174   : > { %v1493_v29 = vadd.f32 %v1461_v33, %v1396_v57  ;;  %v1751_v28 = vmul.f32 %v3093_v19, %v1139_v49  ;;  %v1782_v23 = vadd.f32 %v1750_v17, %v1685_v10  ;;  %v1274_v54 = vmul.f32 %v3051_v12, %v3715_v30  ;;  %2459 = vmatmul.msk.f32.gmra.mxu1 %vm450_vm0, %v2594_v21 }
 0x175   : > { %v1686_v37 = vadd.f32 %v1654_v46, %v1589_v22  ;;  %v946_v0 = vld [vmem:[#allocation2 + $0x1a7] sm:$0xff]  ;;  %v947_v9 = vld [vmem:[#allocation2 + $0x1af] sm:$0xff]  ;;  %v1209_v15 = vadd.f32 %v3654_v52, %v1112_v61  ;;  %v1210_v4 = vadd.f32 %v1178_v47, %v1113_v60  ;;  %v1275_v36 = vmul.f32 %v3051_v12, %v3719_v5 }
 0x176   : > { %v1043_v34 = vld [vmem:[#allocation2 + $0x1a8] sm:$0xff]  ;;  %v979_v49 = vmul.f32 %v3034_v58, %v946_v0  ;;  %v980_v44 = vmul.f32 %v3034_v58, %v947_v9  ;;  %v1268_v2 = vmul.f32 %v3051_v12, %v946_v0  ;;  %v1269_v57 = vmul.f32 %v3051_v12, %v947_v9 }
 0x177   : > { %v1076_v53 = vmul.f32 %v3036_v59, %v1043_v34  ;;  %v1140_v45 = vld [vmem:[#allocation2 + $0x1a9] sm:$0xff]  ;;  %v1365_v52 = vmul.f32 %v3063_v31, %v1043_v34  ;;  %v1304_v17 = vadd.f32 %v3609_v27, %v3548_v62  ;;  %v1558_v58 = vmul.f32 %v3076_v48, %v946_v0  ;;  %v2595_v27 = vld [vmem:[%s2806_s29 + $0xf8] sm:$0xff] }
 0x178   : > { %v1173_v13 = vmul.f32 %v3041_v1, %v1140_v45  ;;  %v1109_v61 = vadd.f32 %v3375_v55, %v980_v44  ;;  %v1300_v60 = vadd.f32 %v1268_v2, %v1203_v32  ;;  %v1301_v59 = vadd.f32 %v1269_v57, %v1204_v56  ;;  %v3747_v55 = vld [vmem:[#allocation2 + $0x208] sm:$0xff]  ;;  %v3755_v0 = vld [vmem:[#allocation2 + $0x210] sm:$0xff] }
 0x179   : > { %v1108_v22 = vadd.f32 %v1076_v53, %v979_v49  ;;  %v1305_v47 = vadd.f32 %v3658_v25, %v3597_v16  ;;  %v1306_v10 = vadd.f32 %v1274_v54, %v1209_v15  ;;  %v1370_v1 = vmul.f32 %v3063_v31, %v3635_v26  ;;  %v2596_v15 = vld [vmem:[%s2806_s29 + $0x30] sm:$0xff] }
 0x17a   : > { %v1206_v33 = vadd.f32 %v3378_v39, %v1109_v61  ;;  %v1397_v38 = vadd.f32 %v1365_v52, %v1300_v60  ;;  %v1462_v62 = vmul.f32 %v3073_v41, %v1140_v45  ;;  %v1398_v32 = vadd.f32 %v3387_v6, %v1301_v59  ;;  %v3774_v57 = vld [vmem:[#allocation2 + $0x209] sm:$0xff] }
 0x17b   : > { %v1205_v12 = vadd.f32 %v1173_v13, %v1108_v22  ;;  %2485 = vmatmul.msk.f32.gmra.mxu2 %vm450_vm0, %v2595_v27  ;;  %v1559_v25 = vmul.f32 %v3076_v48, %v947_v9  ;;  %v1307_v16 = vadd.f32 %v1275_v36, %v1210_v4  ;;  %v1371_v56 = vmul.f32 %v3063_v31, %v3747_v55  ;;  %v4402_v59 = vld [vmem:[#allocation31_spill] sm:$0xff] }
 0x17c   : > { %v1494_v54 = vadd.f32 %v1462_v62, %v1397_v38  ;;  %v1590_v39 = vadd.f32 %v1558_v58, %v1492_v14  ;;  %v1303_v21 = vadd.f32 %v3540_v8, %v1206_v33  ;;  %2460 = vmatmul.msk.f32.gmra.mxu1 %vm450_vm0, %v2596_v15  ;;  %v1372_v6 = vmul.f32 %v3063_v31, %v3755_v0  ;;  %v1534_v58 = vld [vmem:[#allocation2 + $0x22f] sm:$0xff]  ;;  %v4408_v15 = vld [vmem:[#allocation34_spill] sm:$0xff] }
 0x17d   : > { %v1302_v46 = vadd.f32 %v3483_v43, %v1205_v12  ;;  %v1401_v9 = vadd.f32 %v3627_v42, %v1304_v17  ;;  %v1402_v4 = vadd.f32 %v1370_v1, %v1305_v47  ;;  %v1466_v36 = vmul.f32 %v3073_v41, %v3647_v35  ;;  %v4401_v17 = vld [vmem:[#allocation24_spill] sm:$0xff]  ;;  %v4403_v1 = vld [vmem:[#allocation30_spill] sm:$0xff] }
 0x17e   : > { %v1655_v43 = vmul.f32 %v3086_v7, %v1043_v34  ;;  %v1467_v8 = vmul.f32 %v3073_v41, %v3694_v50  ;;  %v1495_v49 = vadd.f32 %v3390_v18, %v1398_v32  ;;  %v1849_v44 = vmax.f32 %v3705_v3, 0.0  ;;  %v3776_v34 = vld [vmem:[#allocation2 + $0x211] sm:$0xff] }
 0x17f   : > { %v1399_v14 = vadd.f32 %v3494_v40, %v1302_v46  ;;  %v3771_v53 = vadd.f32 %v3676_v51, %v1782_v23  ;;  %v1591_v31 = vadd.f32 %v1559_v25, %v1493_v29  ;;  %v1400_v42 = vadd.f32 %v3551_v63, %v1303_v21  ;;  %v4400_v40 = vld [vmem:[#allocation29_spill] sm:$0xff]  ;;  %v4404_v38 = vld [vmem:[#allocation20_spill] sm:$0xff] }
 0x180   : > { %v1783_v2 = vadd.f32 %v1751_v28, %v1686_v37  ;;  %v1687_v13 = vadd.f32 %v1655_v43, %v1590_v39  ;;  %v1592_v22 = vadd.f32 %v4401_v17, %v1494_v54  ;;  %v1403_v61 = vadd.f32 %v1371_v56, %v1306_v10  ;;  %v1533_v37 = vld [vmem:[#allocation2 + $0x227] sm:$0xff]  ;;  %v4406_v32 = vld [vmem:[#allocation36_spill] sm:$0xff]  ;;  %v2597_v46 = vld [vmem:[%s2806_s29 + $0x38] sm:$0xff] }
 0x181   : > { %v1496_v52 = vadd.f32 %v4400_v40, %v1399_v14  ;;  %v1404_v18 = vadd.f32 %v1372_v6, %v1307_v16  ;;  %v1468_v60 = vmul.f32 %v3073_v41, %v3774_v57  ;;  %v1469_v29 = vmul.f32 %v3073_v41, %v3776_v34  ;;  %v4405_v41 = vld [vmem:[#allocation37_spill] sm:$0xff]  ;;  %v4407_v16 = vld [vmem:[#allocation26_spill] sm:$0xff] }
 0x182   : > { %v1752_v63 = vmul.f32 %v3093_v19, %v1140_v45  ;;  %v1498_v28 = vadd.f32 %v1466_v36, %v1401_v9  ;;  %v1499_v23 = vadd.f32 %v1467_v8, %v1402_v4  ;;  %v1593_v47 = vadd.f32 %v4402_v59, %v1495_v49  ;;  %v4409_v9 = vld [vmem:[#allocation32_spill] sm:$0xff]  ;;  %v4410_v49 = vld [vmem:[#allocation21_spill] sm:$0xff] }
 0x183   : > { %v1497_v12 = vadd.f32 %v4403_v1, %v1400_v42  ;;  %v1564_v10 = vmul.f32 %v3076_v48, %v3715_v30  ;;  %v1565_v33 = vmul.f32 %v3076_v48, %v3719_v5  ;;  %v1688_v62 = vadd.f32 %v4404_v38, %v1591_v31 }
 0x184   : > { %v1784_v27 = vadd.f32 %v1752_v63, %v1687_v13  ;;  %v1563_v45 = vmul.f32 %v3076_v48, %v4405_v41  ;;  %v1594_v25 = vadd.f32 %v4406_v32, %v1496_v52  ;;  %v1689_v56 = vadd.f32 %v4407_v16, %v1592_v22  ;;  %2461 = vmatmul.msk.f32.gmra.mxu1 %vm450_vm0, %v2597_v46  ;;  %v4411_v13 = vld [vmem:[#allocation27_spill] sm:$0xff] }
 0x185   : > { %v1500_v54 = vadd.f32 %v1468_v60, %v1403_v61  ;;  %v1501_v39 = vadd.f32 %v1469_v29, %v1404_v18  ;;  %v1566_v30 = vmul.f32 %v3076_v48, %v1533_v37  ;;  %v1567_v21 = vmul.f32 %v3076_v48, %v1534_v58  ;;  %v4412_v48 = vld [vmem:[#allocation33_spill] sm:$0xff]  ;;  %v1630_v60 = vld [vmem:[#allocation2 + $0x228] sm:$0xff]  ;;  %v1631_v29 = vld [vmem:[#allocation2 + $0x230] sm:$0xff] }
 0x186   : > { %v1850_v5 = vmax.f32 %v3771_v53, 0.0  ;;  %v1659_v6 = vmul.f32 %v3086_v7, %v4408_v15  ;;  %v1690_v4 = vadd.f32 %v4409_v9, %v1593_v47  ;;  %v3805_v36 = vadd.f32 %v3676_v51, %v1783_v2 }
 0x187   : > { %v1595_v43 = vadd.f32 %v1563_v45, %v1497_v12  ;;  %v1596_v14 = vadd.f32 %v1564_v10, %v1498_v28  ;;  %v1597_v8 = vadd.f32 %v1565_v33, %v1499_v23  ;;  %v1785_v31 = vadd.f32 %v4410_v49, %v1688_v62  ;;  %v2598_v10 = vld [vmem:[%s2806_s29 + $0x40] sm:$0xff] }
 0x188   : > { %v1691_v42 = vadd.f32 %v1659_v6, %v1594_v25  ;;  %v1755_v40 = vmul.f32 %v3093_v19, %v4411_v13  ;;  %v1786_v52 = vadd.f32 %v4412_v48, %v1689_v56  ;;  %v3812_v17 = vadd.f32 %v3676_v51, %v1784_v27  ;;  %v1727_v25 = vld [vmem:[#allocation2 + $0x229] sm:$0xff] }
 0x189   : > { %v1598_v22 = vadd.f32 %v1566_v30, %v1500_v54  ;;  %v1599_v61 = vadd.f32 %v1567_v21, %v1501_v39  ;;  %v1660_v2 = vmul.f32 %v3086_v7, %v3635_v26  ;;  %v1661_v18 = vmul.f32 %v3086_v7, %v3747_v55  ;;  %v4413_v26 = vld [vmem:[#allocation35_spill] sm:$0xff] }
 0x18a   : > { %v1662_v63 = vmul.f32 %v3086_v7, %v3755_v0  ;;  %v1756_v28 = vmul.f32 %v3093_v19, %v3647_v35  ;;  %v1787_v23 = vadd.f32 %v1755_v40, %v1690_v4  ;;  %v1851_v37 = vmax.f32 %v3805_v36, 0.0  ;;  %v2599_v40 = vld [vmem:[%s2806_s29 + $0x48] sm:$0xff] }
 0x18b   : > { %v1692_v58 = vadd.f32 %v1660_v2, %v1595_v43  ;;  %v3824_v59 = vadd.f32 %v3676_v51, %v1785_v31  ;;  %v1898_v47 = vadd.f32 %v3713_v20, %v4413_v26  ;;  %v1899_v55 = vsel %vm811_vm1, %v1849_v44, 0.0 }
 0x18c   : > { %v1788_v1 = vadd.f32 %v1756_v28, %v1691_v42  ;;  %v3832_v0 = vadd.f32 %v3676_v51, %v1786_v52  ;;  %v1852_v35 = vmax.f32 %v3812_v17, 0.0  ;;  %v1901_v12 = vsel %vm811_vm1, %v1850_v5, 0.0  ;;  %2462 = vmatmul.msk.f32.gmra.mxu1 %vm450_vm0, %v2598_v10  ;;  %v4094_v17 = vld [vmem:[%s4321_s11] ss:$0 sm:$0xff] }
 0x18d   : > { %v1663_v33 = vmul.f32 %v3086_v7, %v1630_v60  ;;  %v1664_v20 = vmul.f32 %v3086_v7, %v1631_v29  ;;  %v1757_v38 = vmul.f32 %v3093_v19, %v3694_v50  ;;  %v1900_v62 = vadd.f32 %v1899_v55, %v1898_v47  ;;  %v1728_v50 = vld [vmem:[#allocation2 + $0x231] sm:$0xff] }
 0x18e   : > { %v1693_v27 = vadd.f32 %v1661_v18, %v1596_v14  ;;  %v1694_v41 = vadd.f32 %v1662_v63, %v1597_v8  ;;  %v1758_v45 = vmul.f32 %v3093_v19, %v3774_v57  ;;  %v1903_v32 = vsel %vm811_vm1, %v1851_v37, 0.0 }
 0x18f   : > { %v1759_v16 = vmul.f32 %v3093_v19, %v3776_v34  ;;  %v1789_v56 = vadd.f32 %v1757_v38, %v1692_v58  ;;  %v3852_v7 = vadd.f32 %v3676_v51, %v1787_v23  ;;  %v1902_v46 = vadd.f32 %v1901_v12, %v1900_v62 }
 0x190   : > { %v3855_v54 = vadd.f32 %v3676_v51, %v1788_v1  ;;  %v1853_v39 = vmax.f32 %v3824_v59, 0.0  ;;  %v1854_v57 = vmax.f32 %v3832_v0, 0.0  ;;  %v1905_v30 = vsel %vm811_vm1, %v1852_v35, 0.0  ;;  %v2600_v1 = vld [vmem:[%s2806_s29 + $0x50] sm:$0xff]  ;;  %v4100_v59 = vld [vmem:[%s4319_s9] ss:$0 sm:$0xff] }
 0x191   : > { %v1904_v21 = vadd.f32 %v1903_v32, %v1902_v46  ;;  %v1695_v34 = vadd.f32 %v1663_v33, %v1598_v22  ;;  %v1696_v15 = vadd.f32 %v1664_v20, %v1599_v61  ;;  %v1760_v6 = vmul.f32 %v3093_v19, %v1727_v25  ;;  %v2601_v32 = vld [vmem:[%s2806_s29 + $0x58] sm:$0xff] }
 0x192   : > { %v1790_v9 = vadd.f32 %v1758_v45, %v1693_v27  ;;  %v1761_v4 = vmul.f32 %v3093_v19, %v1728_v50  ;;  %v1791_v43 = vadd.f32 %v1759_v16, %v1694_v41  ;;  %v3865_v14 = vadd.f32 %v3676_v51, %v1789_v56  ;;  %v2602_v50 = vld [vmem:[%s2806_s29 + $0x60] sm:$0xff] }
 0x193   : > { %v1906_v8 = vadd.f32 %v1905_v30, %v1904_v21  ;;  %v1855_v49 = vmax.f32 %v3852_v7, 0.0  ;;  %v1856_v31 = vmax.f32 %v3855_v54, 0.0  ;;  %v1907_v42 = vsel %vm811_vm1, %v1853_v39, 0.0 }
 0x194   : > { %v1909_v13 = vsel %vm811_vm1, %v1854_v57, 0.0  ;;  %2463 = vmatmul.msk.f32.gmra.mxu1 %vm450_vm0, %v2599_v40  ;;  %v1792_v48 = vadd.f32 %v1760_v6, %v1695_v34  ;;  %v3878_v52 = vadd.f32 %v3676_v51, %v1790_v9  ;;  %v1793_v22 = vadd.f32 %v1761_v4, %v1696_v15  ;;  %v2603_v6 = vld [vmem:[%s2806_s29 + $0x68] sm:$0xff]  ;;  %v2604_v9 = vld [vmem:[%s2806_s29 + $0x70] sm:$0xff]  ;;  %v2605_v4 = vld [vmem:[%s2806_s29 + $0x78] sm:$0xff] }
 0x195   : > { %v1908_v19 = vadd.f32 %v1907_v42, %v1906_v8  ;;  %v3881_v2 = vadd.f32 %v3676_v51, %v1791_v43  ;;  %v1857_v18 = vmax.f32 %v3865_v14, 0.0  ;;  %v1911_v60 = vsel %vm811_vm1, %v1855_v49, 0.0  ;;  %v2606_v43 = vld [vmem:[%s2806_s29 + $0x80] sm:$0xff]  ;;  %v2607_v8 = vld [vmem:[%s2806_s29 + $0x88] sm:$0xff]  ;;  %v2608_v42 = vld [vmem:[%s2806_s29 + $0x90] sm:$0xff] }
 0x196   : > { %v1913_v29 = vsel %vm811_vm1, %v1856_v31, 0.0  ;;  %v3891_v28 = vadd.f32 %v3676_v51, %v1792_v48  ;;  %v1858_v23 = vmax.f32 %v3878_v52, 0.0  ;;  %v3895_v26 = vadd.f32 %v3676_v51, %v1793_v22  ;;  %v2610_v40 = vld [vmem:[%s2806_s29 + $0xa0] sm:$0xff]  ;;  %v2611_v48 = vld [vmem:[%s2806_s29 + $0xa8] sm:$0xff] }
 0x197   : > { %v1910_v61 = vadd.f32 %v1909_v13, %v1908_v19  ;;  %v1859_v47 = vmax.f32 %v3881_v2, 0.0  ;;  %v1915_v55 = vsel %vm811_vm1, %v1857_v18, 0.0  ;;  %v2609_v13 = vld [vmem:[%s2806_s29 + $0x98] sm:$0xff] }
 0x198   : > { %v1860_v10 = vmax.f32 %v3891_v28, 0.0  ;;  %v1917_v33 = vsel %vm811_vm1, %v1858_v23, 0.0  ;;  %v1861_v51 = vmax.f32 %v3895_v26, 0.0 }
 0x199   : > { %v1912_v63 = vadd.f32 %v1911_v60, %v1910_v61  ;;  %v1919_v38 = vsel %vm811_vm1, %v1859_v47, 0.0  ;;  %v2612_v61 = vld [vmem:[%s2806_s29 + $0xb0] sm:$0xff]  ;;  %v2613_v60 = vld [vmem:[%s2806_s29 + $0xb8] sm:$0xff] }
 0x19a   : > { %v1921_v27 = vsel %vm811_vm1, %v1860_v10, 0.0  ;;  %v1923_v45 = vsel %vm811_vm1, %v1861_v51, 0.0 }
 0x19b   : > { %v1914_v58 = vadd.f32 %v1913_v29, %v1912_v63 }
 0x19c   : > { %2464 = vmatmul.msk.f32.gmra.mxu1 %vm450_vm0, %v2600_v1 }
 0x19d   : > { %v1916_v12 = vadd.f32 %v1915_v55, %v1914_v58  ;;  %v1961_v55 = vld [vmem:[%s4317_s7] sm:$0xff] }
 0x19e   : > { %1981 = vmatpush.msra.mxu3 %v1961_v55 }
 0x19f   : > { %v1918_v20 = vadd.f32 %v1917_v33, %v1916_v12  ;;  %v1936_v33 = vld [vmem:[%s4316_s6] sm:$0x1] }
 0x1a1   : > { %v1920_v62 = vadd.f32 %v1919_v38, %v1918_v20 }
 0x1a3   : > { %v1922_v41 = vadd.f32 %v1921_v27, %v1920_v62  ;;  %v2026_v27 = vld [vmem:[%s4318_s8 + $0x18] sm:$0xff] }
 0x1a4   : > { %2465 = vmatmul.msk.f32.gmra.mxu1 %vm450_vm0, %v2601_v32  ;;  %2531 = vmatpush.msrb.mxu3 %v2026_v27  ;;  %v2023_v32 = vld [vmem:[%s4318_s8] sm:$0xff] }
 0x1a5   : > { %v1924_v25 = vadd.f32 %v1923_v45, %v1922_v41  ;;  %v2025_v41 = vld [vmem:[%s4318_s8 + $0x10] sm:$0xff]  ;;  %2139 = vmatpush.msrb.mxu2 %v2026_v27  ;;  %v2024_v45 = vld [vmem:[%s4318_s8 + $0x8] sm:$0xff] }
 0x1a6   : > { %2532 = vmatpush.msrb.mxu3 %v2025_v41 }
 0x1a7   : > { %v1925_v16 = vrot.slane %v1924_v25, 4  ;;  %2140 = vmatpush.msrb.mxu2 %v2025_v41 }
 0x1a8   : > { %2533 = vmatpush.msrb.mxu3 %v2024_v45 }
 0x1a9   : > { %v1926_v56 = vadd.f32 %v1925_v16, %v1924_v25  ;;  %2141 = vmatpush.msrb.mxu2 %v2024_v45  ;;  %v4428_v45 = vld [vmem:[#allocation17_spill] sm:$0xff] }
 0x1aa   : > { %2534 = vmatpush.msrb.mxu3 %v2023_v32 }
 0x1ab   : > { %v1927_v46 = vrot.slane %v1926_v56, 2  ;;  %2142 = vmatpush.msrb.mxu2 %v2023_v32  ;;  %v4429_v32 = vmax.f32 %v4428_v45, 0.0  ;;  %v4444_v45 = vld [vmem:[#allocation23_spill] sm:$0xff] }
 0x1ac   : > { %2466 = vmatmul.msk.f32.gmra.mxu1 %vm450_vm0, %v2602_v50 }
 0x1ad   : > { %v1928_v30 = vadd.f32 %v1927_v46, %v1926_v56 }
 0x1af   : > { %v1929_v21 = vrot.slane %v1928_v30, 1 }
 0x1b1   : > { %v1930_v34 = vadd.f32 %v1929_v21, %v1928_v30  ;;  %v4414_v21 = vld [vmem:[#allocation7_spill] sm:$0xff] }
 0x1b3   : > { %v1931_v15 = vmul.f32 0.00390625, %v1930_v34  ;;  %v4415_v34 = vmax.f32 %v4414_v21, 0.0 }
 0x1b4   : > { %2467 = vmatmul.msk.f32.gmra.mxu1 %vm450_vm0, %v2603_v6  ;;  %v4416_v6 = vld [vmem:[#allocation14_spill] sm:$0xff] }
 0x1b5   : > { %2486 = vmatmul.msk.f32.vlgmr.msra.gmra.mxu2 %vm811_vm1, %v1931_v15 }
 0x1bc   : > { %2468 = vmatmul.msk.f32.gmra.mxu1 %vm450_vm0, %v2604_v9  ;;  %v4417_v9 = vmax.f32 %v4416_v6, 0.0  ;;  %v2614_v6 = vld [vmem:[%s2806_s29 + $0xc0] sm:$0xff] }
 0x1c4   : > { %2469 = vmatmul.msk.f32.gmra.mxu1 %vm450_vm0, %v2605_v4 }
 0x1cb   : > { %v3938_v19 = vpop.f32.mrf.mxu2 }
 0x1cc   : > { %2470 = vmatmul.msk.f32.gmra.mxu1 %vm450_vm0, %v2606_v43  ;;  %v4418_v43 = vld [vmem:[#allocation6_spill] sm:$0xff] }
 0x1d3   : > { %v3942_v22 = vpop.f32.mrf.mxu2 }
 0x1d4   : > { %2471 = vmatmul.msk.f32.gmra.mxu1 %vm450_vm0, %v2607_v8  ;;  %v4419_v8 = vmax.f32 %v4418_v43, 0.0 }
 0x1dc   : > { %2472 = vmatmul.msk.f32.gmra.mxu1 %vm450_vm0, %v2608_v42 }
 0x1de   : > { %v3948_v29 = vpop.f32.mrf.mxu2 }
 0x1e4   : > { %2473 = vmatmul.msk.f32.gmra.mxu1 %vm450_vm0, %v2609_v13  ;;  %v4420_v13 = vld [vmem:[#allocation15_spill] sm:$0xff] }
 0x1e6   : > { %v3950_v63 = vpop.f32.mrf.mxu2 }
 0x1ec   : > { %2474 = vmatmul.msk.f32.gmra.mxu1 %vm450_vm0, %v2610_v40  ;;  %v4421_v40 = vmax.f32 %v4420_v13, 0.0 }
 0x1ee   : > { %v3952_v58 = vpop.f32.mrf.mxu2 }
 0x1f4   : > { %2475 = vmatmul.msk.f32.gmra.mxu1 %vm450_vm0, %v2611_v48 }
 0x1f6   : > { %v3957_v1 = vpop.f32.mrf.mxu2 }
 0x1fc   : > { %2476 = vmatmul.msk.f32.gmra.mxu1 %vm450_vm0, %v2612_v61  ;;  %v4422_v61 = vld [vmem:[#allocation8_spill] sm:$0xff] }
 0x1fe   : > { %v3959_v12 = vpop.f32.mrf.mxu2 }
 0x204   : > { %2477 = vmatmul.msk.f32.gmra.mxu1 %vm450_vm0, %v2613_v60  ;;  %v4423_v60 = vmax.f32 %v4422_v61, 0.0 }
 0x238   : > { %v1957_v20 = vpop.f32.mrf.mxu2 }
 0x239   : > { %v1958_v38 = vadd.f32 %v1957_v20, %v1936_v33  ;;  %v4424_v33 = vld [vmem:[#allocation16_spill] sm:$0xff] }
 0x23a   : > { %v4425_v20 = vmax.f32 %v4424_v33, 0.0 }
 0x23b   : > { %v1960_v62 = vmax.f32 %v1958_v38, 0.0 }
 0x23d   : > { %2487 = vmatmul.msk.f32.vlgmr.msra.gmra.mxu3 %vm1962_vm2, %v1960_v62  ;;  %v4426_v62 = vld [vmem:[#allocation9_spill] sm:$0xff] }
 0x23e   : > { %v4427_v27 = vmax.f32 %v4426_v62, 0.0  ;;  %v4442_v62 = vld [vmem:[#allocation13_spill] sm:$0xff] }
 0x2c0   : > { %v1983_v25 = vpop.f32.mrf.mxu3 }
 0x2c1   : > { %v1986_v16 = vmul.f32 0.16666667, %v1983_v25 }
 0x2c3   : > { %v1987_v56 = vadd.f32 0.5, %v1986_v16  ;;  %v4430_v16 = vld [vmem:[#allocation10_spill] sm:$0xff] }
 0x2c5   : > { %v1988_v46 = vmax.f32 %v1987_v56, 0.0  ;;  %v4431_v56 = vmax.f32 %v4430_v16, 0.0 }
 0x2c7   : > { %v1989_v50 = vmin.f32 %v1988_v46, 1.0 }
 0x2c9   : > { %v3976_v30 = vperm.slane %v1989_v50, 0  ;;  %v4432_v50 = vld [vmem:[#allocation18_spill] sm:$0xff] }
 0x2ca   : > { %v4433_v21 = vmax.f32 %v4432_v50, 0.0 }
 0x2cb   : > { %v1991_v15 = vmul.f32 %v3976_v30, %v4415_v34  ;;  %v1999_v4 = vmul.f32 %v3976_v30, %v4417_v9  ;;  %v1992_v42 = vmul.f32 %v3976_v30, %v4419_v8  ;;  %v2000_v48 = vmul.f32 %v3976_v30, %v4421_v40  ;;  %v4434_v9 = vld [vmem:[#allocation11_spill] sm:$0xff] }
 0x2cc   : > { %v1993_v55 = vmul.f32 %v3976_v30, %v4423_v60  ;;  %v2001_v38 = vmul.f32 %v3976_v30, %v4425_v20  ;;  %v1994_v41 = vmul.f32 %v3976_v30, %v4427_v27  ;;  %v2002_v25 = vmul.f32 %v3976_v30, %v4429_v32  ;;  %v4436_v8 = vld [vmem:[#allocation19_spill] sm:$0xff] }
 0x2cd   : > { %2488 = vmatmul.msk.f32.vlgmr.msrb.gmra.mxu2 %vm811_vm1, %v1991_v15  ;;  %2496 = vmatmul.msk.f32.vlgmr.msrb.gmra.mxu3 %vm811_vm1, %v1999_v4  ;;  %v1995_v46 = vmul.f32 %v3976_v30, %v4431_v56  ;;  %v2003_v34 = vmul.f32 %v3976_v30, %v4433_v21  ;;  %v715_v15 = vpop.f32.mrf.mxu1  ;;  %v4435_v4 = vmax.f32 %v4434_v9, 0.0  ;;  %v4443_v27 = vmax.f32 %v4442_v62, 0.0  ;;  %v4446_v56 = vld [vmem:[#allocation25_spill] sm:$0xff] }
 0x2ce   : > { %2478 = vmatmul.msk.f32.gmra.mxu1 %vm450_vm0, %v2614_v6  ;;  %v4445_v32 = vmax.f32 %v4444_v45, 0.0  ;;  %v716_v0 = vadd.f32 %v4094_v17, %v715_v15 }
 0x2cf   : > { %v1996_v43 = vmul.f32 %v3976_v30, %v4435_v4 }
 0x2d5   : > { %2489 = vmatmul.msk.f32.gmra.mxu2 %vm811_vm1, %v1992_v42  ;;  %2497 = vmatmul.msk.f32.gmra.mxu3 %vm811_vm1, %v2000_v48  ;;  %v4437_v42 = vmax.f32 %v4436_v8, 0.0  ;;  %v718_v40 = vpop.f32.mrf.mxu1  ;;  %v4438_v48 = vld [vmem:[#allocation12_spill] sm:$0xff] }
 0x2d6   : > { %v4439_v61 = vmax.f32 %v4438_v48, 0.0  ;;  %v2011_v48 = vmul.f32 %v3976_v30, %v1850_v5  ;;  %v2014_v5 = vmul.f32 %v3976_v30, %v1853_v39  ;;  %v719_v45 = vadd.f32 %v4094_v17, %v718_v40 }
 0x2d7   : > { %v2004_v13 = vmul.f32 %v3976_v30, %v4437_v42  ;;  %v2010_v42 = vmul.f32 %v3976_v30, %v1849_v44  ;;  %v2013_v44 = vmul.f32 %v3976_v30, %v1852_v35 }
 0x2d8   : > { %v1997_v60 = vmul.f32 %v3976_v30, %v4439_v61 }
 0x2dd   : > { %2490 = vmatmul.msk.f32.gmra.mxu2 %vm811_vm1, %v1993_v55  ;;  %2498 = vmatmul.msk.f32.gmra.mxu3 %vm811_vm1, %v2001_v38  ;;  %v4440_v55 = vld [vmem:[#allocation22_spill] sm:$0xff]  ;;  %v4036_v38 = vpop.f32.mrf.mxu1 }
 0x2de   : > { %v4441_v33 = vmax.f32 %v4440_v55, 0.0  ;;  %v722_v54 = vadd.f32 %v4094_v17, %v4036_v38 }
 0x2e0   : > { %v2005_v20 = vmul.f32 %v3976_v30, %v4441_v33 }
 0x2e5   : > { %2491 = vmatmul.msk.f32.gmra.mxu2 %vm811_vm1, %v1994_v41  ;;  %2499 = vmatmul.msk.f32.gmra.mxu3 %vm811_vm1, %v2002_v25  ;;  %v1998_v41 = vmul.f32 %v3976_v30, %v4443_v27  ;;  %v2006_v25 = vmul.f32 %v3976_v30, %v4445_v32  ;;  %v4046_v16 = vpop.f32.mrf.mxu1 }
 0x2e6   : > { %v725_v14 = vadd.f32 %v4094_v17, %v4046_v16 }
 0x2ed   : > { %2492 = vmatmul.msk.f32.gmra.mxu2 %vm811_vm1, %v1995_v46  ;;  %2500 = vmatmul.msk.f32.gmra.mxu3 %vm811_vm1, %v2003_v34  ;;  %v4447_v46 = vmax.f32 %v4446_v56, 0.0  ;;  %v4052_v21 = vpop.f32.mrf.mxu1  ;;  %v4448_v34 = vld [vmem:[#allocation28_spill] sm:$0xff] }
 0x2ee   : > { %v4449_v6 = vmax.f32 %v4448_v34, 0.0 }
 0x2ef   : > { %v2007_v50 = vmul.f32 %v3976_v30, %v4447_v46 }
 0x2f0   : > { %v2008_v9 = vmul.f32 %v3976_v30, %v4449_v6 }
 0x2f5   : > { %2493 = vmatmul.msk.f32.gmra.mxu2 %vm811_vm1, %v1996_v43  ;;  %2501 = vmatmul.msk.f32.gmra.mxu3 %vm811_vm1, %v2004_v13  ;;  %v4058_v4 = vpop.f32.mrf.mxu1  ;;  %v2009_v43 = vmul.f32 %v3976_v30, %v1848_v11  ;;  %v2012_v11 = vmul.f32 %v3976_v30, %v1851_v37  ;;  %v2015_v37 = vmul.f32 %v3976_v30, %v1854_v57 }
 0x2fd   : > { %2494 = vmatmul.msk.f32.gmra.mxu2 %vm811_vm1, %v1997_v60  ;;  %2502 = vmatmul.msk.f32.gmra.mxu3 %vm811_vm1, %v2005_v20  ;;  %v4064_v8 = vpop.f32.mrf.mxu1  ;;  %v2016_v20 = vmul.f32 %v3976_v30, %v1855_v49 }
 0x2fe   : > { %v734_v28 = vadd.f32 %v4094_v17, %v4064_v8 }
 0x305   : > { %2495 = vmatmul.msk.f32.gmra.mxu2 %vm811_vm1, %v1998_v41  ;;  %2503 = vmatmul.msk.f32.gmra.mxu3 %vm811_vm1, %v2006_v25  ;;  %v4070_v13 = vpop.f32.mrf.mxu1 }
 0x306   : > { %v737_v26 = vadd.f32 %v4094_v17, %v4070_v13 }
 0x30d   : > { %2504 = vmatmul.msk.f32.gmra.mxu3 %vm811_vm1, %v2007_v50  ;;  %v739_v24 = vpop.f32.mrf.mxu1  ;;  %v2017_v50 = vmul.f32 %v3976_v30, %v1856_v31 }
 0x30e   : > { %v740_v35 = vadd.f32 %v4094_v17, %v739_v24 }
 0x315   : > { %2505 = vmatmul.msk.f32.gmra.mxu3 %vm811_vm1, %v2008_v9  ;;  %v742_v3 = vpop.f32.mrf.mxu1 }
 0x316   : > { %v743_v15 = vadd.f32 %v4094_v17, %v742_v3  ;;  %v2018_v3 = vmul.f32 %v3976_v30, %v1857_v18 }
 0x31d   : > { %2506 = vmatmul.msk.f32.gmra.mxu3 %vm811_vm1, %v2009_v43  ;;  %v745_v53 = vpop.f32.mrf.mxu1 }
 0x31e   : > { %v746_v40 = vadd.f32 %v4094_v17, %v745_v53 }
 0x325   : > { %2507 = vmatmul.msk.f32.gmra.mxu3 %vm811_vm1, %v2010_v42  ;;  %v748_v36 = vpop.f32.mrf.mxu1 }
 0x32d   : > { %2508 = vmatmul.msk.f32.gmra.mxu3 %vm811_vm1, %v2011_v48  ;;  %v751_v62 = vpop.f32.mrf.mxu1 }
 0x335   : > { %2509 = vmatmul.msk.f32.gmra.mxu3 %vm811_vm1, %v2012_v11  ;;  %v754_v9 = vpop.f32.mrf.mxu1 }
 0x33d   : > { %2510 = vmatmul.msk.f32.gmra.mxu3 %vm811_vm1, %v2013_v44  ;;  %v757_v38 = vpop.f32.mrf.mxu1 }
 0x345   : > { %2511 = vmatmul.msk.f32.gmra.mxu3 %vm811_vm1, %v2014_v5  ;;  %v749_v5 = vadd.f32 %v4094_v17, %v748_v36 }
 0x34d   : > { %2512 = vmatmul.msk.f32.gmra.mxu3 %vm811_vm1, %v2015_v37 }
 0x350   : > { %v2144_v39 = vpop.f32.mrf.mxu2  ;;  %v2168_v61 = vpop.f32.mrf.mxu3 }
 0x351   : > { %v2145_v57 = vadd.f32 %v4100_v59, %v2144_v39  ;;  %v2169_v60 = vadd.f32 %v4100_v59, %v2168_v61 }
 0x353   : > { %v2240_v55 = vadd.f32 %v2145_v57, %v716_v0  ;;  %v2248_v33 = vadd.f32 %v2169_v60, %v740_v35  ;;  %v2019_v57 = vmul.f32 %v3976_v30, %v1858_v23 }
 0x355   : > { %v2272_v27 = vmax.f32 %v2240_v55, 0.0  ;;  %v2280_v41 = vmax.f32 %v2248_v33, 0.0  ;;  %2513 = vmatmul.msk.f32.gmra.mxu3 %vm811_vm1, %v2016_v20  ;;  %v752_v55 = vadd.f32 %v4094_v17, %v751_v62  ;;  %v728_v20 = vadd.f32 %v4094_v17, %v4052_v21 }
 0x356   : > { %v755_v21 = vadd.f32 %v4094_v17, %v754_v9 }
 0x357   : > { %2305 = vst.msk [vmem:[%s4113_s18] sm:$0xff] %vm2304_vm3, %v2272_v27  ;;  %v760_v27 = vpop.f32.mrf.mxu1 }
 0x358   : > { %2313 = vst.msk [vmem:[%s4113_s18 + $0x40] sm:$0xff] %vm2304_vm3, %v2280_v41  ;;  %v2147_v7 = vpop.f32.mrf.mxu2  ;;  %v2171_v49 = vpop.f32.mrf.mxu3  ;;  %v761_v8 = vadd.f32 %v4094_v17, %v760_v27 }
 0x359   : > { %v2148_v32 = vadd.f32 %v4100_v59, %v2147_v7  ;;  %v2172_v25 = vadd.f32 %v4100_v59, %v2171_v49  ;;  %v2020_v7 = vmul.f32 %v3976_v30, %v1859_v47 }
 0x35b   : > { %v2241_v56 = vadd.f32 %v2148_v32, %v719_v45  ;;  %v2249_v46 = vadd.f32 %v2172_v25, %v743_v15  ;;  %v731_v25 = vadd.f32 %v4094_v17, %v4058_v4  ;;  %v758_v4 = vadd.f32 %v4094_v17, %v757_v38 }
 0x35d   : > { %v2273_v34 = vmax.f32 %v2241_v56, 0.0  ;;  %v2281_v6 = vmax.f32 %v2249_v46, 0.0  ;;  %2514 = vmatmul.msk.f32.gmra.mxu3 %vm811_vm1, %v2017_v50  ;;  %v2021_v50 = vmul.f32 %v3976_v30, %v1860_v10 }
 0x35f   : > { %2306 = vst.msk [vmem:[%s4113_s18 + $0x8] sm:$0xff] %vm2304_vm3, %v2273_v34  ;;  %v763_v34 = vpop.f32.mrf.mxu1 }
 0x360   : > { %2314 = vst.msk [vmem:[%s4113_s18 + $0x48] sm:$0xff] %vm2304_vm3, %v2281_v6  ;;  %v2150_v43 = vpop.f32.mrf.mxu2  ;;  %v2174_v42 = vpop.f32.mrf.mxu3 }
 0x361   : > { %v2151_v31 = vadd.f32 %v4100_v59, %v2150_v43  ;;  %v2175_v48 = vadd.f32 %v4100_v59, %v2174_v42 }
 0x363   : > { %v2242_v24 = vadd.f32 %v2151_v31, %v722_v54  ;;  %v2250_v11 = vadd.f32 %v2175_v48, %v746_v40  ;;  %v2022_v48 = vmul.f32 %v3976_v30, %v1861_v51 }
 0x365   : > { %v2274_v44 = vmax.f32 %v2242_v24, 0.0  ;;  %v2282_v53 = vmax.f32 %v2250_v11, 0.0  ;;  %2515 = vmatmul.msk.f32.gmra.mxu3 %vm811_vm1, %v2018_v3 }
 0x367   : > { %2307 = vst.msk [vmem:[%s4113_s18 + $0x10] sm:$0xff] %vm2304_vm3, %v2274_v44  ;;  %v766_v3 = vpop.f32.mrf.mxu1 }
 0x368   : > { %2315 = vst.msk [vmem:[%s4113_s18 + $0x50] sm:$0xff] %vm2304_vm3, %v2282_v53  ;;  %v2153_v37 = vpop.f32.mrf.mxu2  ;;  %v2177_v35 = vpop.f32.mrf.mxu3 }
 0x369   : > { %v2154_v18 = vadd.f32 %v4100_v59, %v2153_v37  ;;  %v2178_v39 = vadd.f32 %v4100_v59, %v2177_v35 }
 0x36b   : > { %v2243_v61 = vadd.f32 %v2154_v18, %v725_v14  ;;  %v2251_v0 = vadd.f32 %v2178_v39, %v749_v5  ;;  %v764_v14 = vadd.f32 %v4094_v17, %v763_v34 }
 0x36d   : > { %v2275_v36 = vmax.f32 %v2243_v61, 0.0  ;;  %v2283_v60 = vmax.f32 %v2251_v0, 0.0  ;;  %2516 = vmatmul.msk.f32.gmra.mxu3 %vm811_vm1, %v2019_v57  ;;  %v767_v57 = vadd.f32 %v4094_v17, %v766_v3 }
 0x36f   : > { %2308 = vst.msk [vmem:[%s4113_s18 + $0x18] sm:$0xff] %vm2304_vm3, %v2275_v36  ;;  %v769_v39 = vpop.f32.mrf.mxu1 }
 0x370   : > { %2316 = vst.msk [vmem:[%s4113_s18 + $0x58] sm:$0xff] %vm2304_vm3, %v2283_v60  ;;  %v2156_v16 = vpop.f32.mrf.mxu2  ;;  %v2180_v33 = vpop.f32.mrf.mxu3 }
 0x371   : > { %v2157_v52 = vadd.f32 %v4100_v59, %v2156_v16  ;;  %v2181_v23 = vadd.f32 %v4100_v59, %v2180_v33 }
 0x373   : > { %v2244_v41 = vadd.f32 %v2157_v52, %v728_v20  ;;  %v2252_v15 = vadd.f32 %v2181_v23, %v752_v55  ;;  %v770_v20 = vadd.f32 %v4094_v17, %v769_v39 }
 0x375   : > { %v2276_v62 = vmax.f32 %v2244_v41, 0.0  ;;  %v2284_v49 = vmax.f32 %v2252_v15, 0.0  ;;  %2517 = vmatmul.msk.f32.gmra.mxu3 %vm811_vm1, %v2020_v7 }
 0x377   : > { %2309 = vst.msk [vmem:[%s4113_s18 + $0x20] sm:$0xff] %vm2304_vm3, %v2276_v62  ;;  %v772_v55 = vpop.f32.mrf.mxu1 }
 0x378   : > { %2317 = vst.msk [vmem:[%s4113_s18 + $0x60] sm:$0xff] %vm2304_vm3, %v2284_v49  ;;  %v2159_v45 = vpop.f32.mrf.mxu2  ;;  %v2183_v32 = vpop.f32.mrf.mxu3  ;;  %v773_v7 = vadd.f32 %v4094_v17, %v772_v55 }
 0x379   : > { %v2160_v2 = vadd.f32 %v4100_v59, %v2159_v45  ;;  %v2184_v47 = vadd.f32 %v4100_v59, %v2183_v32 }
 0x37b   : > { %v2245_v56 = vadd.f32 %v2160_v2, %v731_v25  ;;  %v2253_v46 = vadd.f32 %v2184_v47, %v755_v21 }
 0x37d   : > { %v2277_v6 = vmax.f32 %v2245_v56, 0.0  ;;  %v2285_v9 = vmax.f32 %v2253_v46, 0.0  ;;  %2518 = vmatmul.msk.f32.gmra.mxu3 %vm811_vm1, %v2021_v50 }
 0x37f   : > { %2310 = vst.msk [vmem:[%s4113_s18 + $0x28] sm:$0xff] %vm2304_vm3, %v2277_v6  ;;  %v775_v41 = vpop.f32.mrf.mxu1 }
 0x380   : > { %2318 = vst.msk [vmem:[%s4113_s18 + $0x68] sm:$0xff] %vm2304_vm3, %v2285_v9  ;;  %v2162_v40 = vpop.f32.mrf.mxu2  ;;  %v2186_v43 = vpop.f32.mrf.mxu3  ;;  %v776_v25 = vadd.f32 %v4094_v17, %v775_v41 }
 0x381   : > { %v2163_v10 = vadd.f32 %v4100_v59, %v2162_v40  ;;  %v2187_v42 = vadd.f32 %v4100_v59, %v2186_v43 }
 0x383   : > { %v2246_v54 = vadd.f32 %v2163_v10, %v734_v28  ;;  %v2254_v31 = vadd.f32 %v2187_v42, %v758_v4 }
 0x385   : > { %v2278_v24 = vmax.f32 %v2246_v54, 0.0  ;;  %v2286_v11 = vmax.f32 %v2254_v31, 0.0  ;;  %2519 = vmatmul.msk.f32.gmra.mxu3 %vm811_vm1, %v2022_v48 }
 0x387   : > { %2311 = vst.msk [vmem:[%s4113_s18 + $0x30] sm:$0xff] %vm2304_vm3, %v2278_v24  ;;  %v778_v32 = vpop.f32.mrf.mxu1 }
 0x388   : > { %2319 = vst.msk [vmem:[%s4113_s18 + $0x70] sm:$0xff] %vm2304_vm3, %v2286_v11  ;;  %v2165_v44 = vpop.f32.mrf.mxu2  ;;  %v2189_v53 = vpop.f32.mrf.mxu3  ;;  %v779_v50 = vadd.f32 %v4094_v17, %v778_v32  ;;  %v809_v32 = vadd.f32 %v4094_v17, %v3959_v12 }
 0x389   : > { %v2166_v51 = vadd.f32 %v4100_v59, %v2165_v44  ;;  %v2190_v30 = vadd.f32 %v4100_v59, %v2189_v53 }
 0x38b   : > { %v2247_v5 = vadd.f32 %v2166_v51, %v737_v26  ;;  %v2255_v38 = vadd.f32 %v2190_v30, %v761_v8 }
 0x38d   : > { %v2279_v37 = vmax.f32 %v2247_v5, 0.0  ;;  %v2287_v35 = vmax.f32 %v2255_v38, 0.0 }
 0x38f   : > { %2312 = vst.msk [vmem:[%s4113_s18 + $0x38] sm:$0xff] %vm2304_vm3, %v2279_v37  ;;  %v781_v6 = vpop.f32.mrf.mxu1  ;;  %v791_v37 = vadd.f32 %v4094_v17, %v3938_v19  ;;  %v797_v19 = vadd.f32 %v4094_v17, %v3948_v29 }
 0x390   : > { %2320 = vst.msk [vmem:[%s4113_s18 + $0x78] sm:$0xff] %vm2304_vm3, %v2287_v35  ;;  %v2192_v18 = vpop.f32.mrf.mxu3  ;;  %v782_v43 = vadd.f32 %v4094_v17, %v781_v6 }
 0x391   : > { %v2193_v61 = vadd.f32 %v4100_v59, %v2192_v18 }
 0x393   : > { %v2256_v13 = vadd.f32 %v2193_v61, %v764_v14  ;;  %v794_v61 = vadd.f32 %v4094_v17, %v3942_v22  ;;  %v800_v22 = vadd.f32 %v4094_v17, %v3950_v63  ;;  %v806_v63 = vadd.f32 %v4094_v17, %v3957_v1 }
 0x395   : > { %v2288_v0 = vmax.f32 %v2256_v13, 0.0 }
 0x397   : > { %2321 = vst.msk [vmem:[%s4113_s18 + $0x80] sm:$0xff] %vm2304_vm3, %v2288_v0  ;;  %v784_v42 = vpop.f32.mrf.mxu1 }
 0x398   : > { %v2195_v36 = vpop.f32.mrf.mxu3  ;;  %v785_v48 = vadd.f32 %v4094_v17, %v784_v42 }
 0x399   : > { %v2196_v60 = vadd.f32 %v4100_v59, %v2195_v36 }
 0x39b   : > { %v2257_v16 = vadd.f32 %v2196_v60, %v767_v57 }
 0x39d   : > { %v2289_v33 = vmax.f32 %v2257_v16, 0.0 }
 0x39f   : > { %2322 = vst.msk [vmem:[%s4113_s18 + $0x88] sm:$0xff] %vm2304_vm3, %v2289_v33  ;;  %v787_v8 = vpop.f32.mrf.mxu1 }
 0x3a0   : > { %v2198_v52 = vpop.f32.mrf.mxu3  ;;  %v788_v53 = vadd.f32 %v4094_v17, %v787_v8 }
 0x3a1   : > { %v2199_v23 = vadd.f32 %v4100_v59, %v2198_v52 }
 0x3a3   : > { %v2258_v27 = vadd.f32 %v2199_v23, %v770_v20 }
 0x3a5   : > { %v2290_v15 = vmax.f32 %v2258_v27, 0.0  ;;  %v803_v27 = vadd.f32 %v4094_v17, %v3952_v58 }
 0x3a7   : > { %2323 = vst.msk [vmem:[%s4113_s18 + $0x90] sm:$0xff] %vm2304_vm3, %v2290_v15 }
 0x3a8   : > { %v2201_v62 = vpop.f32.mrf.mxu3 }
 0x3a9   : > { %v2202_v49 = vadd.f32 %v4100_v59, %v2201_v62 }
 0x3ab   : > { %v2259_v21 = vadd.f32 %v2202_v49, %v773_v7 }
 0x3ad   : > { %v2291_v45 = vmax.f32 %v2259_v21, 0.0 }
 0x3af   : > { %2324 = vst.msk [vmem:[%s4113_s18 + $0x98] sm:$0xff] %vm2304_vm3, %v2291_v45 }
 0x3b0   : > { %v2204_v2 = vpop.f32.mrf.mxu3 }
 0x3b1   : > { %v2205_v47 = vadd.f32 %v4100_v59, %v2204_v2 }
 0x3b3   : > { %v2260_v56 = vadd.f32 %v2205_v47, %v776_v25 }
 0x3b5   : > { %v2292_v46 = vmax.f32 %v2260_v56, 0.0 }
 0x3b7   : > { %2325 = vst.msk [vmem:[%s4113_s18 + $0xa0] sm:$0xff] %vm2304_vm3, %v2292_v46 }
 0x3b8   : > { %v2207_v34 = vpop.f32.mrf.mxu3 }
 0x3b9   : > { %v2208_v9 = vadd.f32 %v4100_v59, %v2207_v34 }
 0x3bb   : > { %v2261_v4 = vadd.f32 %v2208_v9, %v779_v50 }
 0x3bd   : > { %v2293_v40 = vmax.f32 %v2261_v4, 0.0 }
 0x3bf   : > { %2326 = vst.msk [vmem:[%s4113_s18 + $0xa8] sm:$0xff] %vm2304_vm3, %v2293_v40 }
 0x3c0   : > { %v2210_v28 = vpop.f32.mrf.mxu3 }
 0x3c1   : > { %v2211_v10 = vadd.f32 %v4100_v59, %v2210_v28 }
 0x3c3   : > { %v2262_v54 = vadd.f32 %v2211_v10, %v782_v43 }
 0x3c5   : > { %v2294_v31 = vmax.f32 %v2262_v54, 0.0 }
 0x3c7   : > { %2327 = vst.msk [vmem:[%s4113_s18 + $0xb0] sm:$0xff] %vm2304_vm3, %v2294_v31 }
 0x3c8   : > { %v2213_v24 = vpop.f32.mrf.mxu3 }
 0x3c9   : > { %v2214_v11 = vadd.f32 %v4100_v59, %v2213_v24 }
 0x3cb   : > { %v2263_v3 = vadd.f32 %v2214_v11, %v785_v48 }
 0x3cd   : > { %v2295_v44 = vmax.f32 %v2263_v3, 0.0 }
 0x3cf   : > { %2328 = vst.msk [vmem:[%s4113_s18 + $0xb8] sm:$0xff] %vm2304_vm3, %v2295_v44 }
 0x3d0   : > { %v2216_v26 = vpop.f32.mrf.mxu3 }
 0x3d1   : > { %v2217_v51 = vadd.f32 %v4100_v59, %v2216_v26 }
 0x3d3   : > { %v2264_v30 = vadd.f32 %v2217_v51, %v788_v53 }
 0x3d5   : > { %v2296_v5 = vmax.f32 %v2264_v30, 0.0 }
 0x3d7   : > { %2329 = vst.msk [vmem:[%s4113_s18 + $0xc0] sm:$0xff] %vm2304_vm3, %v2296_v5 }
 0x3d8   : > { %v2219_v38 = vpop.f32.mrf.mxu3 }
 0x3d9   : > { %v2220_v35 = vadd.f32 %v4100_v59, %v2219_v38 }
 0x3db   : > { %v2265_v14 = vadd.f32 %v2220_v35, %v791_v37 }
 0x3dd   : > { %v2297_v18 = vmax.f32 %v2265_v14, 0.0 }
 0x3df   : > { %2330 = vst.msk [vmem:[%s4113_s18 + $0xc8] sm:$0xff] %vm2304_vm3, %v2297_v18 }
 0x3e0   : > { %v2222_v39 = vpop.f32.mrf.mxu3 }
 0x3e1   : > { %v2223_v13 = vadd.f32 %v4100_v59, %v2222_v39 }
 0x3e3   : > { %v2266_v0 = vadd.f32 %v2223_v13, %v794_v61 }
 0x3e5   : > { %v2298_v57 = vmax.f32 %v2266_v0, 0.0 }
 0x3e7   : > { %2331 = vst.msk [vmem:[%s4113_s18 + $0xd0] sm:$0xff] %vm2304_vm3, %v2298_v57 }
 0x3e8   : > { %v2225_v36 = vpop.f32.mrf.mxu3 }
 0x3e9   : > { %v2226_v60 = vadd.f32 %v4100_v59, %v2225_v36 }
 0x3eb   : > { %v2267_v55 = vadd.f32 %v2226_v60, %v797_v19 }
 0x3ed   : > { %v2299_v16 = vmax.f32 %v2267_v55, 0.0 }
 0x3ef   : > { %2332 = vst.msk [vmem:[%s4113_s18 + $0xd8] sm:$0xff] %vm2304_vm3, %v2299_v16 }
 0x3f0   : > { %v2228_v33 = vpop.f32.mrf.mxu3 }
 0x3f1   : > { %v2229_v20 = vadd.f32 %v4100_v59, %v2228_v33 }
 0x3f3   : > { %v2268_v52 = vadd.f32 %v2229_v20, %v800_v22 }
 0x3f5   : > { %v2300_v23 = vmax.f32 %v2268_v52, 0.0 }
 0x3f7   : > { %2333 = vst.msk [vmem:[%s4113_s18 + $0xe0] sm:$0xff] %vm2304_vm3, %v2300_v23 }
 0x3f8   : > { %v2231_v29 = vpop.f32.mrf.mxu3 }
 0x3f9   : > { %v2232_v41 = vadd.f32 %v4100_v59, %v2231_v29 }
 0x3fb   : > { %v2269_v15 = vadd.f32 %v2232_v41, %v803_v27 }
 0x3fd   : > { %v2301_v7 = vmax.f32 %v2269_v15, 0.0 }
 0x3ff   : > { %2334 = vst.msk [vmem:[%s4113_s18 + $0xe8] sm:$0xff] %vm2304_vm3, %v2301_v7 }
 0x400   : > { %v2234_v62 = vpop.f32.mrf.mxu3 }
 0x401   : > { %v2235_v49 = vadd.f32 %v4100_v59, %v2234_v62 }
 0x403   : > { %v2270_v21 = vadd.f32 %v2235_v49, %v806_v63 }
 0x405   : > { %v2302_v45 = vmax.f32 %v2270_v21, 0.0 }
 0x407   : > { %2335 = vst.msk [vmem:[%s4113_s18 + $0xf0] sm:$0xff] %vm2304_vm3, %v2302_v45 }
 0x408   : > { %v2237_v58 = vpop.f32.mrf.mxu3 }
 0x409   : > { %v2238_v1 = vadd.f32 %v4100_v59, %v2237_v58 }
 0x40b   : > { %v2271_v25 = vadd.f32 %v2238_v1, %v809_v32 }
 0x40d   : > { %v2303_v2 = vmax.f32 %v2271_v25, 0.0 }
 0x40f   : > { %2336 = vst.msk [vmem:[%s4113_s18 + $0xf8] sm:$0xff] %vm2304_vm3, %v2303_v2 }
 0x410   : > { %2642 = shalt.err (!%p2639_p3)
}
 0x411   : > { %s2680_s16 = smov 128   ;;  %s2681_s18 = smov 8  }
 0x412   : > { %2535 = dma.vmem_to_hbm [thread:$0]  (%p2785_p5), %s2351_s28, 4096, %s2353_s15, %s2338_s25, %s2680_s16, %s2680_s16, %s2681_s18  }
 0x413 PF: > { %p2541_p4 = scmp.ge.s32.totalorder %s2677_s24, 2  ;;  %s2367_s20 = sand.u32 1, %s2665_s21  }
 0x414   : > { %s2368_s1 = scalar_lea.sflag [#allocation4], %s2367_s20 }
 0x415   : > { %p2538_p7 = pnand %p2541_p4, %p2789_p6 }
 0x417   : > { %p2539_p8 = pneg %p2538_p7 }
 0x419   : > { %2660 = dma.done.wait (%p2539_p8), %s2368_s1, 4096  }
 0x41a   : > { %2662 = vsyncadd (%p2539_p8), %s2368_s1, 4294963200  ;;  %p22_p9 = scmp.ge.s32.totalorder %s2772_s27, 4   ;;  %s4450_s21 = smov %s2669_s22 }
 0x41b   : > { %s4451_s22 = smov %s2673_s23  ;;  %s4452_s23 = smov %s2783_s30 }
 0x41c   : > { %s4453_s24 = smov %s2772_s27  ;;  %24 = sbr.rel (!%p22_p9) target bundleno = 6 (0x6), region = 105 }
 0x421   :  { %2374 = vsyncpa [#allocation4], 1 }
 0x422   :  { %2376 = vsyncpa [#allocation4 + $0x1], 1 }

</bundles_post_ra>
